<compile_context>
chip_gen: v7x
topology: tpu7x:2x2x1
jax: 0.10.0
libtpu: 0.0.40
codegen_flags: <defaults>
</compile_context>

<pallas_src>
import jax
import jax.numpy as jnp
from jax import lax
from jax.experimental import pallas as pl
from jax.experimental.pallas import tpu as pltpu


_SQRT_HALF = 0.7071067811865476


# ---------------------------------------------------------------------------
# in-kernel helpers
# ---------------------------------------------------------------------------
def _gelu_exact(x):
    """Exact GELU 0.5*x*(1+erf(x/sqrt(2))) with the A&S 7.1.26 erf approximation.

    Rearranged so the sign handling is a single select and the divide is an EUP
    approximate reciprocal:
        t = 1 / (1 + p*|x|/sqrt(2))
        u = 0.5 * x * poly(t) * exp(-x^2/2)
        gelu(x) = x - u   (x >= 0)
                =     u   (x <  0)
    All math in f32 (VPU + EUP only; v5e-safe).
    """
    p = 0.3275911
    # polynomial coefficients pre-scaled by 0.5 so `u` needs no extra multiply
    a1 = 0.5 * 0.254829592
    a2 = 0.5 * -0.284496736
    a3 = 0.5 * 1.421413741
    a4 = 0.5 * -1.453152027
    a5 = 0.5 * 1.061405429
    az = jnp.abs(x) * _SQRT_HALF
    t = pl.reciprocal(1.0 + p * az, approx=True)          # EUP slot
    poly_half = ((((a5 * t + a4) * t + a3) * t + a2) * t + a1) * t
    e = jnp.exp(-0.5 * x * x)                              # EUP slot (z^2 = x^2/2)
    u = x * poly_half * e
    return jnp.where(x >= 0.0, x - u, u)


# ---------------------------------------------------------------------------
# Pallas kernel: grid = (row tiles of M,), weights resident in VMEM
#   fc1: (tm, C)bf16 @ (C, hidden)bf16 -> f32, + b1, exact GELU (f32)
#   fc2: (tm, hidden)bf16 @ (hidden, C)bf16 -> f32, + b2
# ---------------------------------------------------------------------------
def mlp_kernel(x_ref, w1t_ref, b1_ref, w2t_ref, b2_ref, o_ref):
    h = jnp.dot(x_ref[...], w1t_ref[...], preferred_element_type=jnp.float32)
    h = _gelu_exact(h + b1_ref[...])
    y = jnp.dot(h.astype(w2t_ref.dtype), w2t_ref[...],
                preferred_element_type=jnp.float32)
    # Dropout(p=0.0) == identity, so this is the final output.
    o_ref[...] = (y + b2_ref[...]).astype(o_ref.dtype)


# ---------------------------------------------------------------------------
# wrapper
# ---------------------------------------------------------------------------
def mlp(x, w1, b1, w2, b2, *, tm=2048):
    """x: (B, N, C); w1: (hidden, C); b1: (hidden,); w2: (C, hidden); b2: (C,).

    PyTorch nn.Linear layout: weight (out_features, in_features), bias (out,).
    """
    B, N, C = x.shape
    hidden, c_in = w1.shape
    assert c_in == C and w2.shape == (C, hidden)
    assert b1.shape == (hidden,) and b2.shape == (C,)

    M = B * N
    x2 = x.reshape(M, C)

    # Host-side layout/dtype prep: pre-transposed bf16 weights (no in-kernel
    # .T, native MXU dtype), f32 row biases.
    w1_t = jnp.transpose(w1).astype(jnp.bfloat16)   # (C, hidden)
    w2_t = jnp.transpose(w2).astype(jnp.bfloat16)   # (hidden, C)
    b1r = b1.astype(jnp.float32).reshape(1, hidden)
    b2r = b2.astype(jnp.float32).reshape(1, C)

    # Row tiling: pad M to the 8-row sublane granule, clamp the tile, and make
    # sure the parallel axis has >= 2 tiles so both v7x TensorCores get work.
    m8 = ((M + 7) // 8) * 8
    tm = max(8, min(tm, m8))
    tm = (tm // 8) * 8
    if m8 // tm < 2 and m8 >= 16:
        tm = ((m8 // 2 + 7) // 8) * 8
    m_pad = pl.cdiv(m8, tm) * tm

    x2b = x2.astype(jnp.bfloat16)
    if m_pad != M:
        x2b = jnp.pad(x2b, ((0, m_pad - M), (0, 0)))

    grid = (m_pad // tm,)

    # Weights + biases use a constant block index -> DMA'd once, resident in
    # VMEM across all row tiles.  No hidden-reduction axis, no accumulator.
    # TODO(synk): for much larger Swin stages (e.g. C=1024, hidden=4096) the
    # resident-weight plan should fall back to a hidden-reduction axis on
    # v7x's 64 MiB VMEM and set an explicit vmem_limit_bytes.
    grid_spec = pltpu.PrefetchScalarGridSpec(
        num_scalar_prefetch=0,
        grid=grid,
        in_specs=[
            pl.BlockSpec((tm, C), lambda i: (i, 0)),        # x row tile
            pl.BlockSpec((C, hidden), lambda i: (0, 0)),    # w1^T (resident)
            pl.BlockSpec((1, hidden), lambda i: (0, 0)),    # b1   (resident)
            pl.BlockSpec((hidden, C), lambda i: (0, 0)),    # w2^T (resident)
            pl.BlockSpec((1, C), lambda i: (0, 0)),         # b2   (resident)
        ],
        out_specs=pl.BlockSpec((tm, C), lambda i: (i, 0)),
    )

    out = pl.pallas_call(
        mlp_kernel,
        out_shape=jax.ShapeDtypeStruct((m_pad, C), x.dtype),
        grid_spec=grid_spec,
        compiler_params=pltpu.CompilerParams(
            dimension_semantics=("parallel",)),
    )(x2b, w1_t, b1r, w2_t, b2r)

    return out[:M].reshape(B, N, C)


# ---------------------------------------------------------------------------
# pure-JAX references (independent paths)
# ---------------------------------------------------------------------------
def mlp_ref_f32(x, w1, b1, w2, b2):
    # Full f32, exact (erf) GELU — matches nn.GELU default semantics.
    hp = lax.Precision.HIGHEST
    h = jnp.einsum('bnc,hc->bnh', x, w1, precision=hp) + b1
    h = jax.nn.gelu(h, approximate=False)
    return jnp.einsum('bnh,ch->bnc', h, w2, precision=hp) + b2


def mlp_ref_bf16(x, w1, b1, w2, b2):
    # Same bf16-input / f32-accumulate matmul path as the kernel, exact GELU.
    xb = x.astype(jnp.bfloat16)
    w1b = w1.astype(jnp.bfloat16)
    w2b = w2.astype(jnp.bfloat16)
    h = jnp.einsum('bnc,hc->bnh', xb, w1b,
                   preferred_element_type=jnp.float32) + b1
    h = jax.nn.gelu(h, approximate=False)
    return jnp.einsum('bnh,ch->bnc', h.astype(jnp.bfloat16), w2b,
                      preferred_element_type=jnp.float32) + b2


# ---------------------------------------------------------------------------
# main
# ---------------------------------------------------------------------------
if __name__ == "__main__":
    # Small Swin-like shapes: an 8x8 window of tokens, embed dim 128, ratio 4.
    B, N, C = 2, 64, 128
    mlp_ratio = 4.0
    hidden = round(C * mlp_ratio)   # 512

    key = jax.random.PRNGKey(0)
    kx, k1, k2, k3, k4 = jax.random.split(key, 5)

    x = jax.random.normal(kx, (B, N, C), jnp.float32)
    # PyTorch nn.Linear layout: weight (out_features, in_features), bias (out,)
    w1 = (C ** -0.5) * jax.random.normal(k1, (hidden, C), jnp.float32)
    b1 = 0.1 * jax.random.normal(k2, (hidden,), jnp.float32)
    w2 = (hidden ** -0.5) * jax.random.normal(k3, (C, hidden), jnp.float32)
    b2 = 0.1 * jax.random.normal(k4, (C,), jnp.float32)

    out = mlp(x, w1, b1, w2, b2)
    out = jax.block_until_ready(out)
    assert out.shape == (B, N, C)

    # Algorithmic check: identical bf16-matmul / f32-accumulate compute path,
    # exact GELU (isolates the erf / approx-reciprocal approximations).
    ref_bf16 = mlp_ref_bf16(x, w1, b1, w2, b2)
    assert jnp.allclose(out, ref_bf16, rtol=3e-2, atol=3e-2), \
        "mismatch vs bf16-matched reference"

    # End-to-end fidelity check against the full-f32 exact-GELU reference
    # (tolerance reflects bf16 matmul inputs).
    ref_f32 = mlp_ref_f32(x, w1, b1, w2, b2)
    assert jnp.allclose(out, ref_f32, rtol=8e-2, atol=8e-2), \
        "mismatch vs f32 reference"

    print("KERNEL_OK")
</pallas_src>

<mosaic_0001>
module attributes {stable_mosaic.version = 11 : i64} {
  func.func @mlp_kernel(%arg0: i32, %arg1: memref<64x128xbf16, #tpu.memory_space<vmem>>, %arg2: memref<128x512xbf16, #tpu.memory_space<vmem>>, %arg3: memref<1x512xf32, #tpu.memory_space<vmem>>, %arg4: memref<512x128xbf16, #tpu.memory_space<vmem>>, %arg5: memref<1x128xf32, #tpu.memory_space<vmem>>, %arg6: memref<64x128xf32, #tpu.memory_space<vmem>>) attributes {dimension_semantics = [#tpu.dimension_semantics<parallel>], iteration_bounds = array<i64: 2>, scalar_prefetch = 0 : i64, scratch_operands = 0 : i64, tpu.core_type = #tpu.core_type<tc>, window_params = [{transform_indices = @transform_0, window_bounds = array<i64: 64, 128>}, {pipeline_mode = #tpu.pipeline_mode<synchronous>, transform_indices = @transform_1, window_bounds = array<i64: 128, 512>}, {pipeline_mode = #tpu.pipeline_mode<synchronous>, transform_indices = @transform_2, window_bounds = array<i64: 1, 512>}, {pipeline_mode = #tpu.pipeline_mode<synchronous>, transform_indices = @transform_3, window_bounds = array<i64: 512, 128>}, {pipeline_mode = #tpu.pipeline_mode<synchronous>, transform_indices = @transform_4, window_bounds = array<i64: 1, 128>}, {transform_indices = @transform_5, window_bounds = array<i64: 64, 128>}]} {
    %c0 = arith.constant 0 : index
    %c0_0 = arith.constant 0 : index
    %0 = vector.load %arg1[%c0, %c0_0] : memref<64x128xbf16, #tpu.memory_space<vmem>>, vector<64x128xbf16>
    %c0_1 = arith.constant 0 : index
    %c0_2 = arith.constant 0 : index
    %1 = vector.load %arg2[%c0_1, %c0_2] : memref<128x512xbf16, #tpu.memory_space<vmem>>, vector<128x512xbf16>
    %cst = arith.constant dense<0.000000e+00> : vector<64x512xf32>
    %2 = tpu.matmul %0, %1, %cst {dimension_numbers = #tpu.dot_dimension_numbers<[1], [0], [0], [1], [0, 0, 1, 1], [], []>} : vector<64x128xbf16>, vector<128x512xbf16>, vector<64x512xf32> -> vector<64x512xf32>
    %c0_3 = arith.constant 0 : index
    %c0_4 = arith.constant 0 : index
    %3 = vector.load %arg3[%c0_3, %c0_4] : memref<1x512xf32, #tpu.memory_space<vmem>>, vector<1x512xf32>
    %4 = vector.broadcast %3 : vector<1x512xf32> to vector<64x512xf32>
    %5 = arith.addf %2, %4 : vector<64x512xf32>
    %6 = math.absf %5 : vector<64x512xf32>
    %cst_5 = arith.constant 0.707106769 : f32
    %7 = vector.broadcast %cst_5 : f32 to vector<64x512xf32>
    %8 = arith.mulf %6, %7 : vector<64x512xf32>
    %cst_6 = arith.constant 0.327591091 : f32
    %9 = vector.broadcast %cst_6 : f32 to vector<64x512xf32>
    %10 = arith.mulf %9, %8 : vector<64x512xf32>
    %cst_7 = arith.constant 1.000000e+00 : f32
    %11 = vector.broadcast %cst_7 : f32 to vector<64x512xf32>
    %12 = arith.addf %11, %10 : vector<64x512xf32>
    %13 = tpu.reciprocal %12 {approx = true} : vector<64x512xf32> -> vector<64x512xf32>
    %cst_8 = arith.constant 0.53070271 : f32
    %14 = vector.broadcast %cst_8 : f32 to vector<64x512xf32>
    %15 = arith.mulf %14, %13 : vector<64x512xf32>
    %cst_9 = arith.constant -0.72657603 : f32
    %16 = vector.broadcast %cst_9 : f32 to vector<64x512xf32>
    %17 = arith.addf %15, %16 : vector<64x512xf32>
    %18 = arith.mulf %17, %13 : vector<64x512xf32>
    %cst_10 = arith.constant 0.710706889 : f32
    %19 = vector.broadcast %cst_10 : f32 to vector<64x512xf32>
    %20 = arith.addf %18, %19 : vector<64x512xf32>
    %21 = arith.mulf %20, %13 : vector<64x512xf32>
    %cst_11 = arith.constant -0.142248362 : f32
    %22 = vector.broadcast %cst_11 : f32 to vector<64x512xf32>
    %23 = arith.addf %21, %22 : vector<64x512xf32>
    %24 = arith.mulf %23, %13 : vector<64x512xf32>
    %cst_12 = arith.constant 0.127414793 : f32
    %25 = vector.broadcast %cst_12 : f32 to vector<64x512xf32>
    %26 = arith.addf %24, %25 : vector<64x512xf32>
    %27 = arith.mulf %26, %13 : vector<64x512xf32>
    %cst_13 = arith.constant -5.000000e-01 : f32
    %28 = vector.broadcast %cst_13 : f32 to vector<64x512xf32>
    %29 = arith.mulf %28, %5 : vector<64x512xf32>
    %30 = arith.mulf %29, %5 : vector<64x512xf32>
    %31 = math.exp %30 : vector<64x512xf32>
    %32 = arith.mulf %5, %27 : vector<64x512xf32>
    %33 = arith.mulf %32, %31 : vector<64x512xf32>
    %cst_14 = arith.constant 0.000000e+00 : f32
    %34 = vector.broadcast %cst_14 : f32 to vector<64x512xf32>
    %35 = arith.cmpf oge, %5, %34 : vector<64x512xf32>
    %36 = arith.subf %5, %33 : vector<64x512xf32>
    %37 = arith.select %35, %36, %33 : vector<64x512xi1>, vector<64x512xf32>
    %38 = arith.truncf %37 : vector<64x512xf32> to vector<64x512xbf16>
    %c0_15 = arith.constant 0 : index
    %c0_16 = arith.constant 0 : index
    %39 = vector.load %arg4[%c0_15, %c0_16] : memref<512x128xbf16, #tpu.memory_space<vmem>>, vector<512x128xbf16>
    %cst_17 = arith.constant dense<0.000000e+00> : vector<64x128xf32>
    %40 = tpu.matmul %38, %39, %cst_17 {dimension_numbers = #tpu.dot_dimension_numbers<[1], [0], [0], [1], [0, 0, 1, 1], [], []>} : vector<64x512xbf16>, vector<512x128xbf16>, vector<64x128xf32> -> vector<64x128xf32>
    %c0_18 = arith.constant 0 : index
    %c0_19 = arith.constant 0 : index
    %41 = vector.load %arg5[%c0_18, %c0_19] : memref<1x128xf32, #tpu.memory_space<vmem>>, vector<1x128xf32>
    %42 = vector.broadcast %41 : vector<1x128xf32> to vector<64x128xf32>
    %43 = arith.addf %40, %42 : vector<64x128xf32>
    %c0_20 = arith.constant 0 : index
    %c0_21 = arith.constant 0 : index
    %44 = vector.load %arg6[%c0_20, %c0_21] : memref<64x128xf32, #tpu.memory_space<vmem>>, vector<64x128xf32>
    tpu.vector_store %arg6[%c0_20, %c0_21], %43 {strides = array<i32>} : memref<64x128xf32, #tpu.memory_space<vmem>>, vector<64x128xf32>,
    return
  }
  func.func @transform_0(%arg0: i32) -> (i32, i32) {
    %c0_i32 = arith.constant 0 : i32
    %c0_i32_0 = arith.constant 0 : i32
    return %arg0, %c0_i32 : i32, i32
  }
  func.func @transform_1(%arg0: i32) -> (i32, i32) {
    %c0_i32 = arith.constant 0 : i32
    %c0_i32_0 = arith.constant 0 : i32
    %c0_i32_1 = arith.constant 0 : i32
    return %c0_i32, %c0_i32_0 : i32, i32
  }
  func.func @transform_2(%arg0: i32) -> (i32, i32) {
    %c0_i32 = arith.constant 0 : i32
    %c0_i32_0 = arith.constant 0 : i32
    %c0_i32_1 = arith.constant 0 : i32
    return %c0_i32, %c0_i32_0 : i32, i32
  }
  func.func @transform_3(%arg0: i32) -> (i32, i32) {
    %c0_i32 = arith.constant 0 : i32
    %c0_i32_0 = arith.constant 0 : i32
    %c0_i32_1 = arith.constant 0 : i32
    return %c0_i32, %c0_i32_0 : i32, i32
  }
  func.func @transform_4(%arg0: i32) -> (i32, i32) {
    %c0_i32 = arith.constant 0 : i32
    %c0_i32_0 = arith.constant 0 : i32
    %c0_i32_1 = arith.constant 0 : i32
    return %c0_i32, %c0_i32_0 : i32, i32
  }
  func.func @transform_5(%arg0: i32) -> (i32, i32) {
    %c0_i32 = arith.constant 0 : i32
    %c0_i32_0 = arith.constant 0 : i32
    return %arg0, %c0_i32 : i32, i32
  }
}

</mosaic_0001>

<bundles_post_ra>
// kernel: tpu_custom_call.1
= control target key start
LH: loop header
LB: loop body
LE: loop exit
PB: predicated region body
PF: predicated region fallthrough
CT: control target
= control target key end

     0   :  { %10 = vsyncpa [#allocation3], 0  ;;  %s3611_s0 = inlined_call_operand.hbm [shape: bf16[128,128], index: 0, kind: input, shape index: {}]   ;;  %s3612_s1 = inlined_call_operand.hbm [shape: bf16[128,512], index: 1, kind: input, shape index: {}]   ;;  %s3613_s2 = inlined_call_operand.vmem [shape: f32[1,512], index: 2, kind: input, shape index: {}]   ;;  %s3614_s3 = inlined_call_operand.hbm [shape: bf16[512,128], index: 3, kind: input, shape index: {}]   ;;  %s3615_s4 = inlined_call_operand.vmem [shape: f32[1,128], index: 4, kind: input, shape index: {}]   ;;  %s3616_s5 = inlined_call_operand.hbm [shape: f32[128,128], index: 5, kind: output, shape index: {}]  }
   0x1   :  { %12 = vsyncpa [#allocation3 + $0x1], 0 }
   0x2   :  { %13 = vsyncpa [#allocation6], 0 }
   0x3   :  { %14 = vsyncpa [#allocation4], 0 }
   0x4   :  { %16 = vsyncpa [#allocation4 + $0x1], 0  ;;  %s2580_s18 = smov 0   ;;  %s2582_s19 = smov 0  }
   0x5   :  { %s2584_s20 = smov 0   ;;  %s2586_s21 = smov 0  }
   0x6 LB: > { %s2601_s22 = sadd.s32 4294967295, %s2537_s21   ;;  %s1926_s23 = sadd.s32 4294967294, %s2537_s21   ;;  %s2537_s21 = sphi %s2586_s21, %s3774_s21   ;;  %s2533_s20 = sphi %s2584_s20, %s3773_s20   ;;  %s2529_s19 = sphi %s2582_s19, %s3772_s19   ;;  %s2525_s18 = sphi %s2580_s18, %s3771_s18  }
   0x7   : > { %p42_p0 = scmp.ne.s32.totalorder %s2529_s19, %s2525_s18  ;;  %p3617_p1 = scmp.eq.s32.totalorder %s2601_s22, 0 }
   0x8   : > { %p156_p3 = scmp.eq.s32.totalorder %s1926_s23, 1  ;;  %p1927_p5 = scmp.ge.s32.totalorder %s2537_s21, 1 }
   0x9   : > { %p2610_p4 = por %p3617_p1, %p42_p0  ;;  %p163_p7 = scmp.lt.s32.totalorder %s2537_s21, 3 }
   0xa   : > { %p2615_p6 = por %p156_p3, %p42_p0  ;;  %s2539_s27 = smov [#allocation5]  }
   0xb   : > { %s3668_s24 = scalar_select %p2610_p4, 1, 0 }
   0xc   : > { %s3669_s25 = scalar_select %p2615_p6, 1, 0 }
   0xd   : > { %p2620_p8 = pnand %p1927_p5, %p163_p7  ;;  %s175_s28 = sshll.u32 %s2539_s27, 4  ;;  %s2624_s28 = int_to_ptr.vmem [resolvable:$true] %s175_s28 }
   0xe   : > { %s2540_s30 = smov [#allocation7]   ;;  %s2381_s9 = scalar_lea.hbm %s3612_s1, 4096 }
   0xf   : > { %p2107_p9 = pneg %p2620_p8  ;;  %s191_s6 = sshll.u32 %s2540_s30, 4  ;;  %s2635_s6 = int_to_ptr.vmem [resolvable:$true] %s191_s6 }
  0x10   : > { %p2382_p12 = scmp.ne.s32.totalorder %s3612_s1, %s2381_s9  ;;  %p2388_p5 = scmp.lt.u32.totalorder %s2381_s9, %s3612_s1 }
  0x11   : > { %p2631_p11 = pnand %p2107_p9, %p3617_p1 }
  0x13   : > { %p2383_p13 = pneg %p2631_p11 }
  0x15   : > { %p2384_p0 = pnand %p2383_p13, %p2382_p12 }
  0x17   : > { %p2385_p3 = pneg %p2384_p0 }
  0x19   : > { %p2390_p7 = pnand %p2388_p5, %p2385_p3 }
  0x1b   : > { %2393 = shalt.err (!%p2390_p7)
}
  0x1c   : > { %s2394_s14 = scalar_lea.vmem %s2624_s28, 4096  ;;  %p2402_p2 = scmp.lt.s32.totalorder %s2624_s28, %s2624_s28 }
  0x1d   : > { %p2395_p9 = scmp.ne.s32.totalorder %s2624_s28, %s2394_s14  ;;  %p2403_p12 = scmp.lt.s32.totalorder %s2394_s14, %s2394_s14 }
  0x1f   : > { %p2397_p10 = pnand %p2395_p9, %p2383_p13  ;;  %p2404_p0 = por %p2403_p12, %p2402_p2 }
  0x21   : > { %p2398_p1 = pneg %p2397_p10 }
  0x23   : > { %p2405_p6 = pnand %p2404_p0, %p2398_p1 }
  0x25   : > { %2408 = shalt.err (!%p2405_p6)
}
  0x26   : > { %s2541_s15 = smov 256   ;;  %s2542_s16 = smov 16  }
  0x27   : > { %2110 = dma.hbm_to_vmem [thread:$0]  (!%p2631_p11), %s3612_s1, 4096, %s2624_s28, [#allocation6], %s2541_s15, %s2541_s15, %s2542_s16  }
  0x28   : > { %s2409_s7 = scalar_lea.hbm %s3614_s3, 4096 }
  0x29   : > { %p2410_p2 = scmp.ne.s32.totalorder %s3614_s3, %s2409_s7  ;;  %p2416_p10 = scmp.lt.u32.totalorder %s2409_s7, %s3614_s3 }
  0x2b   : > { %p2412_p1 = pnand %p2410_p2, %p2383_p13 }
  0x2d   : > { %p2413_p6 = pneg %p2412_p1 }
  0x2f   : > { %p2418_p3 = pnand %p2416_p10, %p2413_p6 }
  0x31   : > { %2421 = shalt.err (!%p2418_p3)
}
  0x32   : > { %s2422_s28 = scalar_lea.vmem %s2635_s6, 4096  ;;  %p2430_p12 = scmp.lt.s32.totalorder %s2635_s6, %s2635_s6 }
  0x33   : > { %p2423_p5 = scmp.ne.s32.totalorder %s2635_s6, %s2422_s28  ;;  %p2431_p0 = scmp.lt.s32.totalorder %s2422_s28, %s2422_s28 }
  0x35   : > { %p2425_p7 = pnand %p2423_p5, %p2383_p13  ;;  %p2432_p2 = por %p2431_p0, %p2430_p12 }
  0x37   : > { %p2426_p9 = pneg %p2425_p7 }
  0x39   : > { %p2433_p1 = pnand %p2432_p2, %p2426_p9 }
  0x3b   : > { %2436 = shalt.err (!%p2433_p1)
}
  0x3c   : > { %s2543_s12 = smov 64   ;;  %s2544_s13 = smov 4  }
  0x3d   : > { %2113 = dma.hbm_to_vmem [thread:$0]  (!%p2631_p11), %s3614_s3, 4096, %s2635_s6, [#allocation6], %s2543_s12, %s2543_s12, %s2544_s13  }
  0x3e   : > { %s2693_s16 = sadd.s32 1, %s2537_s21   ;;  %s29_s23 = sadd.s32 1, %s2533_s20 }
  0x3f   : > { %s26_s17 = ssub.s32 %s2537_s21, %s2693_s16  ;;  %p36_p6 = scmp.ne.s32.totalorder %s2533_s20, %s2529_s19 }
  0x40   : > { %p27_p13 = scmp.eq.s32.totalorder %s26_s17, 0  ;;  %p37_p10 = scmp.eq.s32.totalorder %s2537_s21, 0 }
  0x41   : > { %p3672_p5 = scmp.eq.s32.totalorder %s2601_s22, 1  ;;  %p2124_p9 = scmp.lt.s32.totalorder %s2537_s21, 2 }
  0x42   : > { %s2702_s27 = scalar_select %p27_p13, %s2533_s20, %s29_s23  }
  0x43   : > { %p38_p3 = por %p37_p10, %p36_p6  ;;  %p2706_p7 = por %p3672_p5, %p36_p6 }
  0x44   : > { %s208_s30 = sand.u32 1, %s2533_s20   ;;  %s2013_s6 = sshll.u32 %s2537_s21, 9 }
  0x45   : > { %s3673_s29 = scalar_select %p2706_p7, 1, 0 }
  0x46   : > { %s1931_s7 = sshll.u32 %s208_s30, 5  ;;  %s2716_s10 = scalar_lea.hbm %s3611_s0, %s2013_s6 }
  0x47   : > { %s212_s11 = scalar_lea.vmem [#allocation2], %s1931_s7  ;;  %p2720_p11 = pnand %p2124_p9, %p38_p3 }
  0x48   : > { %s219_s28 = sshll.u32 %s212_s11, 4  ;;  %s2724_s15 = scalar_lea.sflag [#allocation3], %s208_s30  ;;  %s2718_s28 = int_to_ptr.vmem [resolvable:$true] %s219_s28 }
  0x49   : > { %s2437_s17 = scalar_lea.hbm %s2716_s10, 512  ;;  %p2439_p0 = pneg %p2720_p11 }
  0x4a   : > { %p2438_p12 = scmp.ne.s32.totalorder %s2716_s10, %s2437_s17  ;;  %s2442_s6 = scalar_lea.hbm %s3611_s0, 1024 }
  0x4b   : > { %p2443_p13 = scmp.lt.u32.totalorder %s2716_s10, %s3611_s0  ;;  %p2444_p6 = scmp.lt.u32.totalorder %s2442_s6, %s2437_s17 }
  0x4c   : > { %p2440_p2 = pnand %p2439_p0, %p2438_p12  ;;  %p2446_p3 = scmp.lt.u32.totalorder %s2437_s17, %s2716_s10 }
  0x4d   : > { %p2445_p10 = por %p2444_p6, %p2443_p13 }
  0x4e   : > { %p2441_p1 = pneg %p2440_p2 }
  0x4f   : > { %p2447_p5 = por %p2446_p3, %p2445_p10 }
  0x51   : > { %p2448_p9 = pnand %p2447_p5, %p2441_p1 }
  0x53   : > { %2451 = shalt.err (!%p2448_p9)
}
  0x54   : > { %s2452_s30 = scalar_lea.vmem %s2718_s28, 512  ;;  %s2545_s11 = smov [#allocation2]  }
  0x55   : > { %p2453_p12 = scmp.ne.s32.totalorder %s2718_s28, %s2452_s30  ;;  %s2457_s23 = sshll.u32 %s2545_s11, 4  ;;  %s2458_s23 = int_to_ptr.vmem [resolvable:$false] %s2457_s23 }
  0x56   : > { %s2459_s7 = scalar_lea.vmem %s2458_s23, 1024  ;;  %p2460_p4 = scmp.lt.s32.totalorder %s2718_s28, %s2458_s23 }
  0x57   : > { %p2455_p2 = pnand %p2453_p12, %p2439_p0  ;;  %p2461_p13 = scmp.lt.s32.totalorder %s2459_s7, %s2452_s30 }
  0x59   : > { %p2456_p7 = pneg %p2455_p2  ;;  %p2462_p6 = por %p2461_p13, %p2460_p4 }
  0x5b   : > { %p2463_p10 = pnand %p2462_p6, %p2456_p7 }
  0x5d   : > { %2466 = shalt.err (!%p2463_p10)
}
  0x5e   : > { %2117 = dma.hbm_to_vmem [thread:$0]  (!%p2720_p11), %s2716_s10, 512, %s2718_s28, %s2724_s15, %s2543_s12, %s2543_s12, %s2544_s13  }
  0x5f   : > { %231 = sbr.rel (%p2620_p8) target bundleno = 796 (0x31c), region = 40 }
  0x66   : > { %s2758_s17 = sand.u32 1, %s2529_s19   ;;  %p3675_p4 = scmp.ne.s32.totalorder %s3668_s24, 0 }
  0x67   : > { %s1935_s6 = sshll.u32 %s2758_s17, 5  ;;  %s234_s8 = scalar_lea.sflag [#allocation3], %s2758_s17 }
  0x68   : > { %s2762_s9 = scalar_lea.vmem [#allocation2], %s1935_s6 }
  0x69   : > { %2512 = dma.done.wait (%p3675_p4), %s234_s8, 512  }
  0x6a   : > { %2514 = vsyncadd (%p3675_p4), %s234_s8, 4294966784  ;;  %p3676_p7 = scmp.eq.s32.totalorder %s2601_s22, 0 }
  0x6c   : > { %2516 = dma.done.wait (%p3676_p7), [#allocation6], 8192   ;;  %p3677_p8 = pmov %p3676_p7 }
  0x6d   : > { %v2546_v0 = vmov 0   ;;  %v2169_v1 = vld [vmem:[#allocation5 + $0x4] ss:$16 sps:$4 sm:$0xff]   ;;  %v2171_v2 = vld [vmem:[#allocation5 + $0xc] ss:$16 sps:$4 sm:$0xff]   ;;  %s1938_s10 = sshll.u32 %s2758_s17, 6 }
  0x6e   : > { %2518 = vsyncadd (%p3677_p8), [#allocation6], 4294959104  ;;  %553 = vmatprep.mubr.bf16.mxu0 %v2546_v0  ;;  %626 = vmatprep.mubr.bf16.mxu1 %v2546_v0  ;;  %v2173_v3 = vld [vmem:[#allocation5] ss:$16 sps:$4 sm:$0xff]   ;;  %v2174_v4 = vld [vmem:[#allocation5 + $0x8] ss:$16 sps:$4 sm:$0xff]  }
  0x6f   : > { %521 = vmatprep.subr.bf16.mxu0 %v2169_v1  ;;  %594 = vmatprep.subr.bf16.mxu1 %v2171_v2  ;;  %v2175_v5 = vld [vmem:[#allocation5 + $0x24] ss:$16 sps:$4 sm:$0xff]   ;;  %v2177_v6 = vld [vmem:[#allocation5 + $0x2c] ss:$16 sps:$4 sm:$0xff]   ;;  %v2179_v7 = vld [vmem:[#allocation5 + $0x20] ss:$16 sps:$4 sm:$0xff]  }
  0x70   : > { %522 = vmatpush1.bf16.msra.mxu0 %v2173_v3  ;;  %595 = vmatpush1.bf16.msra.mxu1 %v2174_v4  ;;  %v2180_v8 = vld [vmem:[#allocation5 + $0x28] ss:$16 sps:$4 sm:$0xff]   ;;  %v2181_v9 = vld [vmem:[#allocation5 + $0x44] ss:$16 sps:$4 sm:$0xff]   ;;  %v2183_v10 = vld [vmem:[#allocation5 + $0x4c] ss:$16 sps:$4 sm:$0xff]  }
  0x71   : > { %523 = vmatprep.subr.bf16.mxu0 %v2175_v5  ;;  %596 = vmatprep.subr.bf16.mxu1 %v2177_v6  ;;  %v2185_v11 = vld [vmem:[#allocation5 + $0x40] ss:$16 sps:$4 sm:$0xff]   ;;  %v2186_v12 = vld [vmem:[#allocation5 + $0x48] ss:$16 sps:$4 sm:$0xff]   ;;  %v2187_v13 = vld [vmem:[#allocation5 + $0x64] ss:$16 sps:$4 sm:$0xff]   ;;  %v317_v5 = vlaneseq }
  0x72   : > { %v2189_v14 = vld [vmem:[#allocation5 + $0x6c] ss:$16 sps:$4 sm:$0xff]   ;;  %v2191_v15 = vld [vmem:[#allocation5 + $0x60] ss:$16 sps:$4 sm:$0xff]   ;;  %v2192_v16 = vld [vmem:[#allocation5 + $0x68] ss:$16 sps:$4 sm:$0xff]  }
  0x73   : > { %v2193_v17 = vld [vmem:[#allocation5 + $0x84] ss:$16 sps:$4 sm:$0xff]   ;;  %v2195_v18 = vld [vmem:[#allocation5 + $0x8c] ss:$16 sps:$4 sm:$0xff]   ;;  %v2197_v19 = vld [vmem:[#allocation5 + $0x80] ss:$16 sps:$4 sm:$0xff]  }
  0x74   : > { %524 = vmatpush1.bf16.msra.mxu0 %v2179_v7  ;;  %597 = vmatpush1.bf16.msra.mxu1 %v2180_v8  ;;  %v2198_v20 = vld [vmem:[#allocation5 + $0x88] ss:$16 sps:$4 sm:$0xff]   ;;  %v2199_v21 = vld [vmem:[#allocation5 + $0xa4] ss:$16 sps:$4 sm:$0xff]   ;;  %v2201_v22 = vld [vmem:[#allocation5 + $0xac] ss:$16 sps:$4 sm:$0xff]  }
  0x75   : > { %525 = vmatprep.subr.bf16.mxu0 %v2181_v9  ;;  %598 = vmatprep.subr.bf16.mxu1 %v2183_v10  ;;  %v2203_v23 = vld [vmem:[#allocation5 + $0xa0] ss:$16 sps:$4 sm:$0xff]   ;;  %v2204_v24 = vld [vmem:[#allocation5 + $0xa8] ss:$16 sps:$4 sm:$0xff]   ;;  %v2205_v25 = vld [vmem:[#allocation5 + $0xc4] ss:$16 sps:$4 sm:$0xff]  }
  0x76   : > { %v2207_v26 = vld [vmem:[#allocation5 + $0xcc] ss:$16 sps:$4 sm:$0xff]   ;;  %v2209_v27 = vld [vmem:[#allocation5 + $0xc0] ss:$16 sps:$4 sm:$0xff]   ;;  %v2210_v28 = vld [vmem:[#allocation5 + $0xc8] ss:$16 sps:$4 sm:$0xff]  }
  0x77   : > { %v2211_v29 = vld [vmem:[#allocation5 + $0xe4] ss:$16 sps:$4 sm:$0xff]   ;;  %v2213_v30 = vld [vmem:[#allocation5 + $0xec] ss:$16 sps:$4 sm:$0xff]   ;;  %v2215_v31 = vld [vmem:[#allocation5 + $0xe0] ss:$16 sps:$4 sm:$0xff]  }
  0x78   : > { %526 = vmatpush1.bf16.msra.mxu0 %v2185_v11  ;;  %599 = vmatpush1.bf16.msra.mxu1 %v2186_v12  ;;  %v2216_v32 = vld [vmem:[#allocation5 + $0xe8] ss:$16 sps:$4 sm:$0xff]   ;;  %v2217_v33 = vld [vmem:[%s2762_s9] sm:$0xff]   ;;  %v2219_v35 = vld [vmem:[%s2762_s9 + $0x10] sm:$0xff]   ;;  %v318_v6 = vshrl.u32 %v317_v5, 7  ;;  %s3544_s28 = scalar_lea.vmem [#allocation8], %s1938_s10 }
  0x79   : > { %527 = vmatprep.subr.bf16.mxu0 %v2187_v13  ;;  %600 = vmatprep.subr.bf16.mxu1 %v2189_v14  ;;  %v2218_v34 = vld [vmem:[%s2762_s9 + $0x8] sm:$0xff]   ;;  %v2220_v36 = vld [vmem:[%s2762_s9 + $0x18] sm:$0xff]   ;;  %v2221_v37 = vld [vmem:[#allocation7 + $0x40] sm:$0xff]   ;;  %s1834_s14 = sshll.u32 %s3544_s28, 4  ;;  %s2014_s15 = sshll.u32 %s2601_s22, 10  ;;  %s3560_s14 = int_to_ptr.vmem [resolvable:$true] %s1834_s14 }
  0x7a   : > { %v2223_v38 = vld [vmem:[#allocation7 + $0xc0] sm:$0xff]   ;;  %v2225_v41 = vld [vmem:[#allocation7 + $0x48] sm:$0xff]   ;;  %v2229_v45 = vld [vmem:[#allocation7 + $0x50] sm:$0xff]   ;;  %v319_v7 = vsub.s32 0, %v318_v6  ;;  %v327_v8 = vsub.s32 2, %v318_v6  ;;  %v323_v10 = vsub.s32 1, %v318_v6  ;;  %s3565_s23 = scalar_lea.hbm %s3616_s5, %s2014_s15 }
  0x7b   : > { %v2222_v39 = vld [vmem:[#allocation7] sm:$0xff]   ;;  %v2227_v42 = vld [vmem:[#allocation7 + $0xc8] sm:$0xff]   ;;  %v2231_v46 = vld [vmem:[#allocation7 + $0xd0] sm:$0xff]   ;;  %v331_v11 = vsub.s32 3, %v318_v6  ;;  %s1821_s7 = scalar_lea.sflag [#allocation4], %s2758_s17  ;;  %s2467_s6 = scalar_lea.vmem %s3560_s14, 1024 }
  0x7c   : > { %528 = vmatpush1.bf16.msra.mxu0 %v2191_v15  ;;  %601 = vmatpush1.bf16.msra.mxu1 %v2192_v16  ;;  %v2224_v40 = vld [vmem:[#allocation7 + $0x80] sm:$0xff]   ;;  %v2226_v43 = vld [vmem:[#allocation7 + $0x8] sm:$0xff]   ;;  %v2230_v47 = vld [vmem:[#allocation7 + $0x10] sm:$0xff]   ;;  %p2468_p11 = scmp.ne.s32.totalorder %s3560_s14, %s2467_s6  ;;  %p3768_p0 = scmp.ne.s32.totalorder %s3673_s29, 0 }
  0x7d   : > { %529 = vmatprep.subr.bf16.mxu0 %v2193_v17  ;;  %602 = vmatprep.subr.bf16.mxu1 %v2195_v18  ;;  %v2228_v44 = vld [vmem:[#allocation7 + $0x88] sm:$0xff]   ;;  %v2232_v48 = vld [vmem:[#allocation7 + $0x90] sm:$0xff]   ;;  %v2233_v49 = vld [vmem:[#allocation7 + $0x58] sm:$0xff]   ;;  %s2547_s22 = smov [#allocation8]  }
  0x7e   : > { %v2235_v50 = vld [vmem:[#allocation7 + $0xd8] sm:$0xff]   ;;  %v2237_v53 = vld [vmem:[#allocation7 + $0x60] sm:$0xff]   ;;  %v2241_v57 = vld [vmem:[#allocation7 + $0x68] sm:$0xff]   ;;  %p2469_p1 = pnand %p2468_p11, %p3768_p0  ;;  %s2471_s8 = sshll.u32 %s2547_s22, 4  ;;  %s2472_s8 = int_to_ptr.vmem [resolvable:$false] %s2471_s8 }
  0x7f   : > { %v2234_v51 = vld [vmem:[#allocation7 + $0x18] sm:$0xff]   ;;  %v2239_v54 = vld [vmem:[#allocation7 + $0xe0] sm:$0xff]   ;;  %v2243_v58 = vld [vmem:[#allocation7 + $0xe8] sm:$0xff]   ;;  %s2473_s9 = scalar_lea.vmem %s2472_s8, 2048  ;;  %p2474_p5 = scmp.lt.s32.totalorder %s3560_s14, %s2472_s8 }
  0x80   : > { %530 = vmatpush1.bf16.msra.mxu0 %v2197_v19  ;;  %603 = vmatpush1.bf16.msra.mxu1 %v2198_v20  ;;  %v2236_v52 = vld [vmem:[#allocation7 + $0x98] sm:$0xff]   ;;  %v2238_v55 = vld [vmem:[#allocation7 + $0x20] sm:$0xff]   ;;  %v2242_v59 = vld [vmem:[#allocation7 + $0x28] sm:$0xff]   ;;  %p2470_p3 = pneg %p2469_p1  ;;  %p2475_p9 = scmp.lt.s32.totalorder %s2473_s9, %s2467_s6 }
  0x81   : > { %531 = vmatprep.subr.bf16.mxu0 %v2199_v21  ;;  %604 = vmatprep.subr.bf16.mxu1 %v2201_v22  ;;  %v2240_v56 = vld [vmem:[#allocation7 + $0xa0] sm:$0xff]   ;;  %v2244_v60 = vld [vmem:[#allocation7 + $0xa8] sm:$0xff]   ;;  %v2245_v61 = vld [vmem:[#allocation7 + $0x70] sm:$0xff]  }
  0x82   : > { %v2247_v62 = vld [vmem:[#allocation7 + $0xf0] sm:$0xff]   ;;  %v2249_v1 = vld [vmem:[#allocation7 + $0x78] sm:$0xff]   ;;  %v315_v9 = vld [vmem:[%s3613_s2] sm:$0xf]  ;;  %p2476_p12 = por %p2475_p9, %p2474_p5 }
  0x83   : > { %v2246_v63 = vld [vmem:[#allocation7 + $0x30] sm:$0xff]   ;;  %v2251_v2 = vld [vmem:[#allocation7 + $0xf8] sm:$0xff]   ;;  %v2787_v12 = vrot.slane %v315_v9, %v319_v7  ;;  %v2789_v13 = vrot.slane %v315_v9, %v327_v8  ;;  %v2791_v14 = vrot.slane %v315_v9, %v323_v10  ;;  %v2793_v15 = vrot.slane %v315_v9, %v331_v11 }
  0x84   : > { %532 = vmatpush1.bf16.msra.mxu0 %v2203_v23  ;;  %605 = vmatpush1.bf16.msra.mxu1 %v2204_v24  ;;  %v2250_v3 = vld [vmem:[#allocation7 + $0x38] sm:$0xff]   ;;  %p2477_p2 = pnand %p2476_p12, %p2470_p3 }
  0x85   : > { %533 = vmatprep.subr.bf16.mxu0 %v2205_v25  ;;  %606 = vmatprep.subr.bf16.mxu1 %v2207_v26  ;;  %v2252_v4 = vld [vmem:[#allocation7 + $0xb8] sm:$0xff]  }
  0x88   : > { %534 = vmatpush1.bf16.msra.mxu0 %v2209_v27  ;;  %607 = vmatpush1.bf16.msra.mxu1 %v2210_v28 }
  0x89   : > { %535 = vmatprep.subr.bf16.mxu0 %v2211_v29  ;;  %608 = vmatprep.subr.bf16.mxu1 %v2213_v30 }
  0x8c   : > { %536 = vmatpush1.bf16.msra.mxu0 %v2215_v31  ;;  %609 = vmatpush1.bf16.msra.mxu1 %v2216_v32 }
  0x8d   : > { %2015 = vmatprep.subr.bf16.mxu0 %v2221_v37  ;;  %2055 = vmatprep.subr.bf16.mxu1 %v2223_v38 }
  0x8f   : > { %554 = vmatmul.mubr.bf16.vlgmr.msra.gmra.mrb[0].mxu0 %v2217_v33  ;;  %627 = vmatmul.mubr.bf16.vlgmr.msra.gmra.mrb[0].mxu1 %v2217_v33 }
  0x90   : > { %563 = vmatprep.mubr.bf16.mxu0 %v2546_v0  ;;  %636 = vmatprep.mubr.bf16.mxu1 %v2546_v0 }
  0x91   : > { %2016 = vmatpush3.bf16.msra.mxu0 %v2222_v39  ;;  %2056 = vmatpush3.bf16.msra.mxu1 %v2224_v40 }
  0x92   : > { %2017 = vmatprep.subr.bf16.mxu0 %v2225_v41  ;;  %2057 = vmatprep.subr.bf16.mxu1 %v2227_v42 }
  0x95   : > { %2018 = vmatpush3.bf16.msra.mxu0 %v2226_v43  ;;  %2058 = vmatpush3.bf16.msra.mxu1 %v2228_v44 }
  0x96   : > { %2019 = vmatprep.subr.bf16.mxu0 %v2229_v45  ;;  %2059 = vmatprep.subr.bf16.mxu1 %v2231_v46 }
  0x97   : > { %564 = vmatmul.mubr.bf16.gmra.mrb[4].mxu0 %v2218_v34  ;;  %637 = vmatmul.mubr.bf16.gmra.mrb[4].mxu1 %v2218_v34 }
  0x98   : > { %573 = vmatprep.mubr.bf16.mxu0 %v2546_v0  ;;  %646 = vmatprep.mubr.bf16.mxu1 %v2546_v0 }
  0x99   : > { %2020 = vmatpush3.bf16.msra.mxu0 %v2230_v47  ;;  %2060 = vmatpush3.bf16.msra.mxu1 %v2232_v48 }
  0x9a   : > { %2021 = vmatprep.subr.bf16.mxu0 %v2233_v49  ;;  %2061 = vmatprep.subr.bf16.mxu1 %v2235_v50 }
  0x9d   : > { %2022 = vmatpush3.bf16.msra.mxu0 %v2234_v51  ;;  %2062 = vmatpush3.bf16.msra.mxu1 %v2236_v52 }
  0x9e   : > { %2023 = vmatprep.subr.bf16.mxu0 %v2237_v53  ;;  %2063 = vmatprep.subr.bf16.mxu1 %v2239_v54 }
  0x9f   : > { %574 = vmatmul.mubr.bf16.gmra.mrb[8].mxu0 %v2219_v35  ;;  %647 = vmatmul.mubr.bf16.gmra.mrb[8].mxu1 %v2219_v35 }
  0xa0   : > { %583 = vmatprep.mubr.bf16.mxu0 %v2546_v0  ;;  %656 = vmatprep.mubr.bf16.mxu1 %v2546_v0  ;;  %v2248_v0 = vld [vmem:[#allocation7 + $0xb0] sm:$0xff]  }
  0xa1   : > { %2024 = vmatpush3.bf16.msra.mxu0 %v2238_v55  ;;  %2064 = vmatpush3.bf16.msra.mxu1 %v2240_v56 }
  0xa2   : > { %2025 = vmatprep.subr.bf16.mxu0 %v2241_v57  ;;  %2065 = vmatprep.subr.bf16.mxu1 %v2243_v58 }
  0xa5   : > { %2026 = vmatpush3.bf16.msra.mxu0 %v2242_v59  ;;  %2066 = vmatpush3.bf16.msra.mxu1 %v2244_v60 }
  0xa6   : > { %2027 = vmatprep.subr.bf16.mxu0 %v2245_v61  ;;  %2067 = vmatprep.subr.bf16.mxu1 %v2247_v62 }
  0xa7   : > { %584 = vmatmul.mubr.bf16.gmra.mrb[12].mxu0 %v2220_v36  ;;  %657 = vmatmul.mubr.bf16.gmra.mrb[12].mxu1 %v2220_v36 }
  0xa9   : > { %2028 = vmatpush3.bf16.msra.mxu0 %v2246_v63  ;;  %2068 = vmatpush3.bf16.msra.mxu1 %v2248_v0 }
  0xaa   : > { %2029 = vmatprep.subr.bf16.mxu0 %v2249_v1  ;;  %2069 = vmatprep.subr.bf16.mxu1 %v2251_v2 }
  0xad   : > { %2030 = vmatpush3.bf16.msra.mxu0 %v2250_v3  ;;  %2070 = vmatpush3.bf16.msra.mxu1 %v2252_v4 }
 0x162   : > { %v555_v16 = vpop.f32.mrb[0].mxu0  ;;  %v628_v17 = vpop.f32.mrb[0].mxu1 }
 0x163   : > { %v2796_v18 = vadd.f32 %v555_v16, %v2787_v12  ;;  %v2799_v19 = vadd.f32 %v628_v17, %v2789_v13  ;;  %v557_v20 = vpop.f32.mrb[1].mxu0  ;;  %v630_v21 = vpop.f32.mrb[1].mxu1 }
 0x164   : > { %v2802_v22 = vadd.f32 %v557_v20, %v2791_v14  ;;  %v2805_v23 = vadd.f32 %v630_v21, %v2793_v15  ;;  %v559_v24 = vpop.f32.mrb[2].mxu0  ;;  %v632_v25 = vpop.f32.mrb[2].mxu1 }
 0x165   : > { %v667_v26 = vand.u32 2147483647, %v2796_v18  ;;  %v1115_v27 = vmul.f32 -0.5, %v2796_v18  ;;  %v669_v28 = vand.u32 2147483647, %v2799_v19  ;;  %v1117_v29 = vmul.f32 -0.5, %v2799_v19 }
 0x166   : > { %3678 = vst [vmem:[#allocation12_spill] sm:$0xff] %v2805_v23  ;;  %v668_v30 = vand.u32 2147483647, %v2802_v22  ;;  %v670_v31 = vand.u32 2147483647, %v2805_v23  ;;  %v561_v34 = vpop.f32.mrb[3].mxu0  ;;  %v2818_v43 = vadd.f32 %v559_v24, %v2787_v12  ;;  %v2821_v45 = vadd.f32 %v632_v25, %v2789_v13 }
 0x167   : > { %v699_v32 = vmul.f32 0.70710677, %v667_v26  ;;  %v701_v33 = vmul.f32 0.70710677, %v669_v28  ;;  %v634_v35 = vpop.f32.mrb[3].mxu1  ;;  %v1147_v36 = vmul.f32 %v1115_v27, %v2796_v18  ;;  %v1116_v38 = vmul.f32 -0.5, %v2802_v22 }
 0x168   : > { %v700_v37 = vmul.f32 0.70710677, %v668_v30  ;;  %v1118_v39 = vmul.f32 -0.5, %v2805_v23  ;;  %v1149_v42 = vmul.f32 %v1117_v29, %v2799_v19  ;;  %v702_v44 = vmul.f32 0.70710677, %v670_v31 }
 0x169   : > { %v731_v40 = vmul.f32 0.3275911, %v699_v32  ;;  %v733_v41 = vmul.f32 0.3275911, %v701_v33  ;;  %v1179_v51 = vmul.f32 1.442695, %v1147_v36  ;;  %v1148_v52 = vmul.f32 %v1116_v38, %v2802_v22 }
 0x16a   : > { %v732_v48 = vmul.f32 0.3275911, %v700_v37  ;;  %v565_v49 = vpop.f32.mrb[4].mxu0  ;;  %v638_v50 = vpop.f32.mrb[4].mxu1  ;;  %v671_v53 = vand.u32 2147483647, %v2818_v43  ;;  %v1150_v56 = vmul.f32 %v1118_v39, %v2805_v23  ;;  %v2835_v62 = vadd.f32 %v561_v34, %v2791_v14 }
 0x16b   : > { %v763_v46 = vadd.f32 1.0, %v731_v40  ;;  %v765_v47 = vadd.f32 1.0, %v733_v41  ;;  %v2825_v54 = vpop.f32.mrb[5].mxu0  ;;  %v1183_v55 = vmul.f32 1.442695, %v1149_v42  ;;  %v2829_v58 = vpop.f32.mrb[5].mxu1  ;;  %v2842_v4 = vadd.f32 %v634_v35, %v2793_v15 }
 0x16c   : > { %v673_v57 = vand.u32 2147483647, %v2821_v45  ;;  %v2831_v59 = vpop.f32.mrb[6].mxu0  ;;  %v703_v60 = vmul.f32 0.70710677, %v671_v53  ;;  %v1119_v61 = vmul.f32 -0.5, %v2818_v43  ;;  %v2860_v32 = vadd.f32 %v565_v49, %v2787_v12 }
 0x16d   : > { %2253 = vrcp.f32 %v763_v46  ;;  %3679 = vst [vmem:[#allocation13_spill] sm:$0xff] %v2835_v62  ;;  %v2837_v63 = vpop.f32.mrb[6].mxu1  ;;  %v2839_v0 = vpop.f32.mrb[7].mxu0  ;;  %v764_v1 = vadd.f32 1.0, %v732_v48  ;;  %v734_v2 = vmul.f32 0.3275911, %v702_v44  ;;  %v2868_v37 = vadd.f32 %v638_v50, %v2789_v13 }
 0x16e   : > { %2255 = vrcp.f32 %v765_v47  ;;  %v705_v3 = vmul.f32 0.70710677, %v673_v57  ;;  %3680 = vst [vmem:[#allocation14_spill] sm:$0xff] %v2842_v4  ;;  %v2844_v5 = vpop.f32.mrb[7].mxu1  ;;  %v735_v6 = vmul.f32 0.3275911, %v703_v60  ;;  %v1151_v20 = vmul.f32 %v1119_v61, %v2818_v43 }
 0x16f   : > { %2257 = vpow2.f32 %v1179_v51  ;;  %v1121_v7 = vmul.f32 -0.5, %v2821_v45  ;;  %v672_v8 = vand.u32 2147483647, %v2835_v62  ;;  %v1181_v9 = vmul.f32 1.442695, %v1148_v52  ;;  %3681 = vst [vmem:[#allocation15_spill] sm:$0xff] %v2860_v32 }
 0x170   : > { %2259 = vpow2.f32 %v1183_v55  ;;  %v737_v10 = vmul.f32 0.3275911, %v705_v3  ;;  %v1120_v11 = vmul.f32 -0.5, %v2835_v62  ;;  %v1185_v16 = vmul.f32 1.442695, %v1150_v56  ;;  %3682 = vst [vmem:[#allocation16_spill] sm:$0xff] %v2868_v37 }
 0x171   : > { %v767_v17 = vadd.f32 1.0, %v735_v6  ;;  %v704_v21 = vmul.f32 0.70710677, %v672_v8  ;;  %2261 = vrcp.f32 %v764_v1  ;;  %v766_v25 = vadd.f32 1.0, %v734_v2 }
 0x172   : > { %v2850_v24 = vpop.f32.mrb[8].mxu0  ;;  %v769_v26 = vadd.f32 1.0, %v737_v10  ;;  %v674_v27 = vand.u32 2147483647, %v2842_v4  ;;  %v2853_v28 = vpop.f32.mrb[8].mxu1  ;;  %v1153_v30 = vmul.f32 %v1121_v7, %v2821_v45  ;;  %v1122_v31 = vmul.f32 -0.5, %v2842_v4 }
 0x173   : > { %v2855_v29 = vpop.f32.mrb[9].mxu0  ;;  %2263 = vrcp.f32 %v767_v17  ;;  %v2862_v33 = vpop.f32.mrb[9].mxu1  ;;  %v1152_v35 = vmul.f32 %v1120_v11, %v2835_v62  ;;  %v1187_v40 = vmul.f32 1.442695, %v1151_v20  ;;  %v675_v41 = vand.u32 2147483647, %v2860_v32 }
 0x174   : > { %v2864_v34 = vpop.f32.mrb[10].mxu0  ;;  %2265 = vrcp.f32 %v769_v26  ;;  %v706_v36 = vmul.f32 0.70710677, %v674_v27  ;;  %v2870_v38 = vpop.f32.mrb[10].mxu1  ;;  %v736_v46 = vmul.f32 0.3275911, %v704_v21  ;;  %v1154_v47 = vmul.f32 %v1122_v31, %v2842_v4 }
 0x175   : > { %v2872_v39 = vpop.f32.mrb[11].mxu0  ;;  %2267 = vpow2.f32 %v1181_v9  ;;  %v2875_v42 = vpop.f32.mrb[11].mxu1  ;;  %v1123_v48 = vmul.f32 -0.5, %v2860_v32  ;;  %v677_v49 = vand.u32 2147483647, %v2868_v37  ;;  %v2896_v20 = vadd.f32 %v2825_v54, %v2791_v14 }
 0x176   : > { %2269 = vrcp.f32 %v766_v25  ;;  %v738_v52 = vmul.f32 0.3275911, %v706_v36  ;;  %v707_v53 = vmul.f32 0.70710677, %v675_v41  ;;  %v1191_v56 = vmul.f32 1.442695, %v1153_v30 }
 0x177   : > { %v2877_v44 = vpop.eup %2253  ;;  %v1189_v57 = vmul.f32 1.442695, %v1152_v35  ;;  %v1155_v60 = vmul.f32 %v1123_v48, %v2860_v32  ;;  %2271 = vpow2.f32 %v1185_v16  ;;  %v709_v2 = vmul.f32 0.70710677, %v677_v49  ;;  %3683 = vst [vmem:[#allocation17_spill] sm:$0xff] %v2896_v20 }
 0x178   : > { %v2882_v50 = vpop.eup %2255  ;;  %v827_v51 = vmul.f32 0.5307027, %v2877_v44  ;;  %2273 = vpow2.f32 %v1187_v40  ;;  %v768_v8 = vadd.f32 1.0, %v736_v46  ;;  %v1193_v9 = vmul.f32 1.442695, %v1154_v47 }
 0x179   : > { %v829_v55 = vmul.f32 0.5307027, %v2882_v50  ;;  %v2887_v61 = vpop.eup %2257  ;;  %v770_v11 = vadd.f32 1.0, %v738_v52  ;;  %v739_v17 = vmul.f32 0.3275911, %v707_v53  ;;  %v1125_v30 = vmul.f32 -0.5, %v2868_v37 }
 0x17a   : > { %v859_v1 = vadd.f32 -0.72657603, %v827_v51  ;;  %v2889_v3 = vpop.f32.mrb[12].mxu0  ;;  %v2891_v6 = vpop.eup %2259  ;;  %v1195_v27 = vmul.f32 1.442695, %v1155_v60  ;;  %v2908_v31 = vadd.f32 %v2829_v58, %v2793_v15  ;;  %2275 = vpow2.f32 %v1191_v56 }
 0x17b   : > { %v861_v7 = vadd.f32 -0.72657603, %v829_v55  ;;  %v2898_v21 = vpop.f32.mrb[12].mxu1  ;;  %v2900_v16 = vpop.f32.mrb[13].mxu0  ;;  %v741_v41 = vmul.f32 0.3275911, %v709_v2  ;;  %2277 = vpow2.f32 %v1189_v57  ;;  %v1157_v57 = vmul.f32 %v1125_v30, %v2868_v37 }
 0x17c   : > { %v891_v10 = vmul.f32 %v2877_v44, %v859_v1  ;;  %v2902_v25 = vpop.eup %2261  ;;  %3684 = vst [vmem:[#allocation18_spill] sm:$0xff] %v2908_v31  ;;  %v2910_v35 = vpop.f32.mrb[13].mxu1  ;;  %v676_v46 = vand.u32 2147483647, %v2896_v20  ;;  %v1124_v58 = vmul.f32 -0.5, %v2896_v20  ;;  %2279 = vrcp.f32 %v768_v8 }
 0x17d   : > { %v893_v26 = vmul.f32 %v2882_v50, %v861_v7  ;;  %v2912_v36 = vpop.f32.mrb[14].mxu0  ;;  %v2914_v54 = vpop.eup %2263  ;;  %2281 = vpow2.f32 %v1193_v9  ;;  %vm1307_vm0 = vcmp.ge.f32.partialorder %v2796_v18, 0.0  ;;  %vm1311_vm1 = vcmp.ge.f32.partialorder %v2818_v43, 0.0 }
 0x17e   : > { %v923_v40 = vadd.f32 0.7107069, %v891_v10  ;;  %v2917_v47 = vpop.eup %2265  ;;  %v831_v49 = vmul.f32 0.5307027, %v2914_v54  ;;  %v2921_v51 = vpop.f32.mrb[14].mxu1  ;;  %v1156_v23 = vmul.f32 %v1124_v58, %v2896_v20  ;;  %2283 = vrcp.f32 %v770_v11 }
 0x17f   : > { %v925_v48 = vadd.f32 0.7107069, %v893_v26  ;;  %v2923_v52 = vpop.eup %2267  ;;  %v833_v55 = vmul.f32 0.5307027, %v2917_v47  ;;  %v708_v56 = vmul.f32 0.70710677, %v676_v46  ;;  %2285 = vpow2.f32 %v1195_v27 }
 0x180   : > { %3685 = vst [vmem:[#allocation19_spill] sm:$0xff] %v2923_v52  ;;  %v955_v53 = vmul.f32 %v2877_v44, %v923_v40  ;;  %v2927_v60 = vpop.f32.mrb[15].mxu0  ;;  %v2929_v1 = vpop.f32.mrb[15].mxu1  ;;  %v863_v7 = vadd.f32 -0.72657603, %v831_v49  ;;  %v771_v40 = vadd.f32 1.0, %v739_v17  ;;  %v2939_v52 = vadd.f32 %v2831_v59, %v2787_v12 }
 0x181   : > { %v957_v2 = vmul.f32 %v2882_v50, %v925_v48  ;;  %v678_v10 = vand.u32 2147483647, %v2908_v31  ;;  %v2934_v26 = vpop.eup %2269  ;;  %v865_v4 = vadd.f32 -0.72657603, %v833_v55  ;;  %v740_v46 = vmul.f32 0.3275911, %v708_v56 }
 0x182   : > { %v987_v32 = vadd.f32 -0.14224836, %v955_v53  ;;  %3686 = vst [vmem:[#allocation20_spill] sm:$0xff] %v2939_v52  ;;  %v2941_v48 = vpop.eup %2271  ;;  %v895_v30 = vmul.f32 %v2914_v54, %v863_v7  ;;  %v773_v49 = vadd.f32 1.0, %v741_v41  ;;  %v1199_v58 = vmul.f32 1.442695, %v1157_v57 }
 0x183   : > { %v989_v8 = vadd.f32 -0.14224836, %v957_v2  ;;  %3687 = vst [vmem:[#allocation21_spill] sm:$0xff] %v2941_v48  ;;  %v710_v37 = vmul.f32 0.70710677, %v678_v10  ;;  %v2944_v62 = vpop.eup %2273  ;;  %v897_v17 = vmul.f32 %v2917_v47, %v865_v4  ;;  %2287 = vrcp.f32 %v771_v40 }
 0x184   : > { %v1019_v9 = vmul.f32 %v2877_v44, %v987_v32  ;;  %v1197_v53 = vmul.f32 1.442695, %v1156_v23  ;;  %v772_v55 = vadd.f32 1.0, %v740_v46  ;;  %v1126_v56 = vmul.f32 -0.5, %v2908_v31  ;;  %v2951_v11 = vpop.eup %2275 }
 0x185   : > { %v1021_v59 = vmul.f32 %v2882_v50, %v989_v8  ;;  %v679_v2 = vand.u32 2147483647, %v2939_v52  ;;  %v927_v41 = vadd.f32 0.7107069, %v895_v30  ;;  %2289 = vrcp.f32 %v773_v49  ;;  %v2953_v10 = vpop.eup %2277 }
 0x186   : > { %v742_v7 = vmul.f32 0.3275911, %v710_v37  ;;  %3688 = vst [vmem:[#allocation22_spill] sm:$0xff] %v2953_v10  ;;  %v929_v4 = vadd.f32 0.7107069, %v897_v17  ;;  %2291 = vpow2.f32 %v1199_v58  ;;  %v1127_v32 = vmul.f32 -0.5, %v2939_v52  ;;  %v2956_v27 = vpop.eup %2279 }
 0x187   : > { %v1051_v23 = vadd.f32 0.1274148, %v1019_v9  ;;  %2293 = vpow2.f32 %v1197_v53  ;;  %v711_v57 = vmul.f32 0.70710677, %v679_v2  ;;  %v1053_v40 = vadd.f32 0.1274148, %v1021_v59  ;;  %v2972_v58 = vpop.eup %2281 }
 0x188   : > { %2295 = vrcp.f32 %v772_v55  ;;  %v1158_v8 = vmul.f32 %v1126_v56, %v2908_v31  ;;  %v2961_v46 = vadd.f32 %v2837_v63, %v2789_v13  ;;  %v959_v37 = vmul.f32 %v2914_v54, %v927_v41  ;;  %3691 = vst [vmem:[#allocation25_spill] sm:$0xff] %v2972_v58  ;;  %v2978_v55 = vpop.eup %2283 }
 0x189   : > { %v774_v30 = vadd.f32 1.0, %v742_v7  ;;  %v2966_v49 = vadd.f32 %v2839_v0, %v2791_v14  ;;  %v2970_v17 = vadd.f32 %v2844_v5, %v2793_v15  ;;  %v961_v9 = vmul.f32 %v2917_v47, %v929_v4  ;;  %v2983_v41 = vpop.eup %2285 }
 0x18a   : > { %3689 = vst [vmem:[#allocation23_spill] sm:$0xff] %v2961_v46  ;;  %v1159_v53 = vmul.f32 %v1127_v32, %v2939_v52  ;;  %v681_v63 = vand.u32 2147483647, %v2961_v46  ;;  %v1129_v59 = vmul.f32 -0.5, %v2961_v46  ;;  %v1083_v56 = vmul.f32 %v2877_v44, %v1051_v23  ;;  %3692 = vst [vmem:[#allocation26_spill] sm:$0xff] %v2983_v41 }
 0x18b   : > { %3690 = vst [vmem:[#allocation24_spill] sm:$0xff] %v2970_v17  ;;  %v743_v0 = vmul.f32 0.3275911, %v711_v57  ;;  %v680_v2 = vand.u32 2147483647, %v2966_v49  ;;  %v1128_v5 = vmul.f32 -0.5, %v2966_v49  ;;  %v1085_v7 = vmul.f32 %v2882_v50, %v1053_v40 }
 0x18c   : > { %v1201_v4 = vmul.f32 1.442695, %v1158_v8  ;;  %v713_v31 = vmul.f32 0.70710677, %v681_v63  ;;  %v1161_v32 = vmul.f32 %v1129_v59, %v2961_v46  ;;  %v991_v20 = vadd.f32 -0.14224836, %v959_v37 }
 0x18d   : > { %v2987_v52 = vpop.eup %2287  ;;  %v712_v58 = vmul.f32 0.70710677, %v680_v2  ;;  %v1160_v48 = vmul.f32 %v1128_v5, %v2966_v49  ;;  %v682_v44 = vand.u32 2147483647, %v2970_v17  ;;  %v993_v23 = vadd.f32 -0.14224836, %v961_v9 }
 0x18e   : > { %2297 = vrcp.f32 %v774_v30  ;;  %v1203_v57 = vmul.f32 1.442695, %v1159_v53  ;;  %v1130_v10 = vmul.f32 -0.5, %v2970_v17  ;;  %v2995_v50 = vmul.f32 %v1083_v56, %v2796_v18 }
 0x18f   : > { %v2992_v41 = vpop.eup %2289  ;;  %v775_v40 = vadd.f32 1.0, %v743_v0  ;;  %v745_v8 = vmul.f32 0.3275911, %v713_v31  ;;  %v714_v63 = vmul.f32 0.70710677, %v682_v44  ;;  %v3000_v37 = vmul.f32 %v1085_v7, %v2799_v19 }
 0x190   : > { %v2997_v59 = vpop.eup %2291  ;;  %2299 = vpow2.f32 %v1201_v4  ;;  %v1207_v2 = vmul.f32 1.442695, %v1161_v32  ;;  %v3004_v30 = vadd.f32 %v2850_v24, %v2787_v12  ;;  %v1023_v53 = vmul.f32 %v2914_v54, %v991_v20 }
 0x191   : > { %3693 = vst [vmem:[#allocation27_spill] sm:$0xff] %v2997_v59  ;;  %v3006_v9 = vpop.eup %2293  ;;  %v744_v56 = vmul.f32 0.3275911, %v712_v58  ;;  %v1205_v5 = vmul.f32 1.442695, %v1160_v48  ;;  %v3011_v31 = vadd.f32 %v2853_v28, %v2789_v13  ;;  %2301 = vpow2.f32 %v1203_v57 }
 0x192   : > { %3694 = vst [vmem:[#allocation28_spill] sm:$0xff] %v3004_v30  ;;  %3695 = vst [vmem:[#allocation29_spill] sm:$0xff] %v3006_v9  ;;  %v3013_v0 = vpop.eup %2295  ;;  %v1162_v7 = vmul.f32 %v1130_v10, %v2970_v17  ;;  %v683_v4 = vand.u32 2147483647, %v3004_v30  ;;  %v1131_v24 = vmul.f32 -0.5, %v3004_v30  ;;  %2303 = vrcp.f32 %v775_v40 }
 0x193   : > { %3696 = vst [vmem:[#allocation30_spill] sm:$0xff] %v3011_v31  ;;  %v777_v32 = vadd.f32 1.0, %v745_v8  ;;  %v746_v44 = vmul.f32 0.3275911, %v714_v63  ;;  %v685_v20 = vand.u32 2147483647, %v3011_v31  ;;  %2305 = vpow2.f32 %v1207_v2 }
 0x194   : > { %v715_v48 = vmul.f32 0.70710677, %v683_v4  ;;  %v1133_v58 = vmul.f32 -0.5, %v3011_v31  ;;  %v3022_v28 = vadd.f32 %v2855_v29, %v2791_v14  ;;  %v776_v57 = vadd.f32 1.0, %v744_v56 }
 0x195   : > { %2307 = vpow2.f32 %v1205_v5  ;;  %v1163_v10 = vmul.f32 %v1131_v24, %v3004_v30  ;;  %v3027_v59 = vadd.f32 %v2862_v33, %v2793_v15  ;;  %v1209_v40 = vmul.f32 1.442695, %v1162_v7 }
 0x196   : > { %3697 = vst [vmem:[#allocation31_spill] sm:$0xff] %v3022_v28  ;;  %v717_v8 = vmul.f32 0.70710677, %v685_v20  ;;  %v684_v63 = vand.u32 2147483647, %v3022_v28  ;;  %v3032_v2 = vadd.f32 %v2864_v34, %v2787_v12  ;;  %v1025_v4 = vmul.f32 %v2917_v47, %v993_v23 }
 0x197   : > { %3698 = vst [vmem:[#allocation32_spill] sm:$0xff] %v3027_v59  ;;  %2309 = vrcp.f32 %v777_v32  ;;  %v778_v29 = vadd.f32 1.0, %v746_v44  ;;  %v1132_v56 = vmul.f32 -0.5, %v3022_v28  ;;  %v747_v24 = vmul.f32 0.3275911, %v715_v48 }
 0x198   : > { %3699 = vst [vmem:[#allocation33_spill] sm:$0xff] %v3032_v2  ;;  %v3036_v5 = vpop.eup %2297  ;;  %v1165_v33 = vmul.f32 %v1133_v58, %v3011_v31  ;;  %v716_v30 = vmul.f32 0.70710677, %v684_v63  ;;  %v686_v7 = vand.u32 2147483647, %v3027_v59  ;;  %2311 = vrcp.f32 %v776_v57 }
 0x199   : > { %v1055_v20 = vadd.f32 0.1274148, %v1023_v53  ;;  %v1211_v46 = vmul.f32 1.442695, %v1163_v10  ;;  %v1134_v34 = vmul.f32 -0.5, %v3027_v59  ;;  %2313 = vpow2.f32 %v1209_v40 }
 0x19a   : > { %v3041_v17 = vpop.eup %2299  ;;  %v749_v23 = vmul.f32 0.3275911, %v717_v8  ;;  %v718_v32 = vmul.f32 0.70710677, %v686_v7  ;;  %v687_v44 = vand.u32 2147483647, %v3032_v2  ;;  %2315 = vrcp.f32 %v778_v29 }
 0x19b   : > { %3700 = vst [vmem:[#allocation34_spill] sm:$0xff] %v3041_v17  ;;  %v1057_v9 = vadd.f32 0.1274148, %v1025_v4  ;;  %v1164_v48 = vmul.f32 %v1132_v56, %v3022_v28  ;;  %v1135_v58 = vmul.f32 -0.5, %v3032_v2  ;;  %v3046_v63 = vpop.eup %2301  ;;  %v779_v53 = vadd.f32 1.0, %v747_v24 }
 0x19c   : > { %3701 = vst [vmem:[#allocation35_spill] sm:$0xff] %v3046_v63  ;;  %v1215_v57 = vmul.f32 1.442695, %v1165_v33  ;;  %v748_v10 = vmul.f32 0.3275911, %v716_v30  ;;  %v3050_v31 = vadd.f32 %v2870_v38, %v2789_v13  ;;  %v3052_v40 = vpop.eup %2303  ;;  %v1166_v8 = vmul.f32 %v1134_v34, %v3027_v59 }
 0x19d   : > { %v719_v7 = vmul.f32 0.70710677, %v687_v44  ;;  %v3057_v4 = vadd.f32 %v2872_v39, %v2791_v14  ;;  %v3061_v29 = vadd.f32 %v2875_v42, %v2793_v15  ;;  %v3063_v56 = vpop.eup %2305  ;;  %2317 = vpow2.f32 %v1211_v46 }
 0x19e   : > { %3702 = vst [vmem:[#allocation36_spill] sm:$0xff] %v3050_v31  ;;  %3703 = vst [vmem:[#allocation37_spill] sm:$0xff] %v3063_v56  ;;  %v781_v30 = vadd.f32 1.0, %v749_v23  ;;  %v750_v24 = vmul.f32 0.3275911, %v718_v32  ;;  %v1167_v34 = vmul.f32 %v1135_v58, %v3032_v2  ;;  %v1137_v44 = vmul.f32 -0.5, %v3050_v31 }
 0x19f   : > { %v689_v38 = vand.u32 2147483647, %v3050_v31  ;;  %v3066_v33 = vpop.eup %2307  ;;  %v1213_v28 = vmul.f32 1.442695, %v1164_v48  ;;  %v688_v39 = vand.u32 2147483647, %v3057_v4  ;;  %v1087_v59 = vmul.f32 %v2914_v54, %v1055_v20 }
 0x1a0   : > { %3704 = vst [vmem:[#allocation38_spill] sm:$0xff] %v3066_v33  ;;  %2319 = vpow2.f32 %v1215_v57  ;;  %v780_v42 = vadd.f32 1.0, %v748_v10  ;;  %v1217_v46 = vmul.f32 1.442695, %v1166_v8  ;;  %v751_v23 = vmul.f32 0.3275911, %v719_v7 }
 0x1a1   : > { %v721_v63 = vmul.f32 0.70710677, %v689_v38  ;;  %v3072_v56 = vpop.eup %2309  ;;  %2321 = vrcp.f32 %v779_v53  ;;  %v690_v32 = vand.u32 2147483647, %v3061_v29  ;;  %v782_v48 = vadd.f32 1.0, %v750_v24 }
 0x1a2   : > { %2323 = vrcp.f32 %v781_v30  ;;  %v720_v17 = vmul.f32 0.70710677, %v688_v39  ;;  %v1136_v58 = vmul.f32 -0.5, %v3057_v4  ;;  %v3076_v2 = vpop.eup %2311  ;;  %v1219_v33 = vmul.f32 1.442695, %v1167_v34 }
 0x1a3   : > { %2325 = vpow2.f32 %v1213_v28  ;;  %v1169_v54 = vmul.f32 %v1137_v44, %v3050_v31  ;;  %v3081_v20 = vadd.f32 %v2889_v3, %v2787_v12  ;;  %v3083_v53 = vpop.eup %2313  ;;  %v753_v57 = vmul.f32 0.3275911, %v721_v63 }
 0x1a4   : > { %2327 = vrcp.f32 %v780_v42  ;;  %v722_v10 = vmul.f32 0.70710677, %v690_v32  ;;  %v3087_v8 = vadd.f32 %v2898_v21, %v2789_v13  ;;  %v3089_v7 = vpop.eup %2315  ;;  %v783_v28 = vadd.f32 1.0, %v751_v23 }
 0x1a5   : > { %3705 = vst [vmem:[#allocation39_spill] sm:$0xff] %v3081_v20  ;;  %2329 = vpow2.f32 %v1217_v46  ;;  %v1138_v30 = vmul.f32 -0.5, %v3061_v29  ;;  %v691_v24 = vand.u32 2147483647, %v3081_v20  ;;  %v752_v3 = vmul.f32 0.3275911, %v720_v17 }
 0x1a6   : > { %3706 = vst [vmem:[#allocation40_spill] sm:$0xff] %v3087_v8  ;;  %2331 = vrcp.f32 %v782_v48  ;;  %v1168_v38 = vmul.f32 %v1136_v58, %v3057_v4  ;;  %v693_v34 = vand.u32 2147483647, %v3087_v8  ;;  %v1089_v63 = vmul.f32 %v2917_v47, %v1057_v9 }
 0x1a7   : > { %2333 = vpow2.f32 %v1219_v33  ;;  %v1223_v44 = vmul.f32 1.442695, %v1169_v54  ;;  %v723_v21 = vmul.f32 0.70710677, %v691_v24  ;;  %v3096_v39 = vpop.eup %2317  ;;  %v785_v42 = vadd.f32 1.0, %v753_v57 }
 0x1a8   : > { %3707 = vst [vmem:[#allocation41_spill] sm:$0xff] %v3096_v39  ;;  %v754_v46 = vmul.f32 0.3275911, %v722_v10  ;;  %v725_v23 = vmul.f32 0.70710677, %v693_v34  ;;  %v3100_v32 = vadd.f32 %v2900_v16, %v2791_v14  ;;  %v3103_v17 = vmul.f32 %v1087_v59, %v2818_v43 }
 0x1a9   : > { %2335 = vrcp.f32 %v783_v28  ;;  %v1170_v48 = vmul.f32 %v1138_v30, %v3061_v29  ;;  %v3108_v47 = vadd.f32 %v2910_v35, %v2793_v15  ;;  %v784_v33 = vadd.f32 1.0, %v752_v3 }
 0x1aa   : > { %3708 = vst [vmem:[#allocation42_spill] sm:$0xff] %v3100_v32  ;;  %v3110_v9 = vpop.eup %2319  ;;  %v1221_v58 = vmul.f32 1.442695, %v1168_v38  ;;  %v1139_v54 = vmul.f32 -0.5, %v3081_v20  ;;  %v692_v57 = vand.u32 2147483647, %v3100_v32  ;;  %2337 = vpow2.f32 %v1223_v44 }
 0x1ab   : > { %3709 = vst [vmem:[#allocation43_spill] sm:$0xff] %v3108_v47  ;;  %3710 = vst [vmem:[#allocation44_spill] sm:$0xff] %v3110_v9  ;;  %v3114_v16 = vpop.eup %2321  ;;  %v755_v59 = vmul.f32 0.3275911, %v723_v21  ;;  %v1140_v10 = vmul.f32 -0.5, %v3100_v32  ;;  %2339 = vrcp.f32 %v785_v42  ;;  %v786_v35 = vadd.f32 1.0, %v754_v46 }
 0x1ac   : > { %v694_v28 = vand.u32 2147483647, %v3108_v47  ;;  %v3118_v30 = vpop.eup %2323  ;;  %v757_v24 = vmul.f32 0.3275911, %v725_v23  ;;  %v724_v34 = vmul.f32 0.70710677, %v692_v57  ;;  %v3126_v44 = vadd.f32 %v2912_v36, %v2787_v12 }
 0x1ad   : > { %v3120_v3 = vpop.eup %2325  ;;  %v1225_v38 = vmul.f32 1.442695, %v1170_v48  ;;  %v1141_v9 = vmul.f32 -0.5, %v3087_v8  ;;  %v1172_v31 = vmul.f32 %v1140_v10, %v3100_v32  ;;  %2341 = vrcp.f32 %v784_v33 }
 0x1ae   : > { %3711 = vst [vmem:[#allocation45_spill] sm:$0xff] %v3126_v44  ;;  %v3128_v21 = vpop.eup %2327  ;;  %v1171_v39 = vmul.f32 %v1139_v54, %v3081_v20  ;;  %v726_v42 = vmul.f32 0.70710677, %v694_v28  ;;  %v3133_v46 = vadd.f32 %v2921_v51, %v2789_v13  ;;  %v3138_v48 = vmul.f32 %v1089_v63, %v2821_v45 }
 0x1af   : > { %v3135_v23 = vpop.eup %2329  ;;  %2343 = vpow2.f32 %v1221_v58  ;;  %v787_v57 = vadd.f32 1.0, %v755_v59  ;;  %v695_v12 = vand.u32 2147483647, %v3126_v44  ;;  %v789_v33 = vadd.f32 1.0, %v757_v24 }
 0x1b0   : > { %3712 = vst [vmem:[#allocation46_spill] sm:$0xff] %v3133_v46  ;;  %v3141_v36 = vpop.eup %2331  ;;  %2345 = vrcp.f32 %v786_v35  ;;  %v756_v10 = vmul.f32 0.3275911, %v724_v34  ;;  %v1142_v54 = vmul.f32 -0.5, %v3108_v47  ;;  %v1173_v13 = vmul.f32 %v1141_v9, %v3087_v8 }
 0x1b1   : > { %v3144_v28 = vpop.eup %2333  ;;  %2347 = vpow2.f32 %v1225_v38  ;;  %v1229_v51 = vmul.f32 1.442695, %v1172_v31  ;;  %v697_v63 = vand.u32 2147483647, %v3133_v46  ;;  %v3148_v20 = vmul.f32 1.442695, %v1171_v39 }
 0x1b2   : > { %3713 = vst [vmem:[#allocation47_spill] sm:$0xff] %v3144_v28  ;;  %v758_v58 = vmul.f32 0.3275911, %v726_v42  ;;  %v1143_v59 = vmul.f32 -0.5, %v3126_v44  ;;  %v3153_v35 = vadd.f32 %v2927_v60, %v2791_v14  ;;  %2349 = vrcp.f32 %v787_v57 }
 0x1b3   : > { %3714 = vst [vmem:[#allocation48_spill] sm:$0xff] %v3148_v20  ;;  %v3155_v24 = vpop.eup %2335  ;;  %v727_v34 = vmul.f32 0.70710677, %v695_v12  ;;  %v1145_v38 = vmul.f32 -0.5, %v3133_v46  ;;  %v3160_v31 = vadd.f32 %v2929_v1, %v2793_v15  ;;  %2351 = vrcp.f32 %v789_v33 }
 0x1b4   : > { %3715 = vst [vmem:[#allocation49_spill] sm:$0xff] %v3153_v35  ;;  %v788_v39 = vadd.f32 1.0, %v756_v10  ;;  %v1174_v9 = vmul.f32 %v1142_v54, %v3108_v47  ;;  %v696_v42 = vand.u32 2147483647, %v3153_v35  ;;  %v3164_v8 = vpop.eup %2337  ;;  %2353 = vpow2.f32 %v1229_v51 }
 0x1b5   : > { %3716 = vst [vmem:[#allocation50_spill] sm:$0xff] %v3160_v31  ;;  %3717 = vst [vmem:[#allocation51_spill] sm:$0xff] %v3164_v8  ;;  %v729_v14 = vmul.f32 0.70710677, %v697_v63  ;;  %v1144_v60 = vmul.f32 -0.5, %v3153_v35  ;;  %v3168_v12 = vpop.eup %2339  ;;  %v790_v32 = vadd.f32 1.0, %v758_v58  ;;  %v1175_v15 = vmul.f32 %v1143_v59, %v3126_v44 }
 0x1b6   : > { %v698_v57 = vand.u32 2147483647, %v3160_v31  ;;  %v728_v1 = vmul.f32 0.70710677, %v696_v42  ;;  %v1146_v33 = vmul.f32 -0.5, %v3160_v31  ;;  %v1177_v54 = vmul.f32 %v1145_v38, %v3133_v46 }
 0x1b7   : > { %v759_v10 = vmul.f32 0.3275911, %v727_v34  ;;  %v1176_v47 = vmul.f32 %v1144_v60, %v3153_v35  ;;  %v828_v51 = vmul.f32 0.5307027, %v2902_v25  ;;  %v3175_v63 = vpop.eup %2341  ;;  %v3177_v20 = vmul.f32 1.442695, %v1173_v13 }
 0x1b8   : > { %2355 = vrcp.f32 %v788_v39  ;;  %v730_v8 = vmul.f32 0.70710677, %v698_v57  ;;  %v832_v58 = vmul.f32 0.5307027, %v2956_v27  ;;  %v761_v59 = vmul.f32 0.3275911, %v729_v14 }
 0x1b9   : > { %3718 = vst [vmem:[#allocation52_spill] sm:$0xff] %v3177_v20  ;;  %v3180_v28 = vpop.eup %2343  ;;  %v760_v42 = vmul.f32 0.3275911, %v728_v1  ;;  %v1178_v34 = vmul.f32 %v1146_v33, %v3160_v31  ;;  %v860_v44 = vadd.f32 -0.72657603, %v828_v51  ;;  %2357 = vrcp.f32 %v790_v32 }
 0x1ba   : > { %v3183_v38 = vpop.eup %2345  ;;  %v1233_v60 = vmul.f32 1.442695, %v1174_v9  ;;  %v3185_v46 = vmul.f32 1.442695, %v1175_v15  ;;  %v864_v35 = vadd.f32 -0.72657603, %v832_v58 }
 0x1bb   : > { %v3187_v13 = vpop.eup %2347  ;;  %v791_v39 = vadd.f32 1.0, %v759_v10  ;;  %v3189_v57 = vmul.f32 1.442695, %v1177_v54  ;;  %v3191_v20 = vmul.f32 1.442695, %v1176_v47  ;;  %v892_v14 = vmul.f32 %v2902_v25, %v860_v44 }
 0x1bc   : > { %3719 = vst [vmem:[#allocation53_spill] sm:$0xff] %v3185_v46  ;;  %v762_v1 = vmul.f32 0.3275911, %v730_v8  ;;  %v896_v33 = vmul.f32 %v2956_v27, %v864_v35  ;;  %v830_v51 = vmul.f32 0.5307027, %v2934_v26  ;;  %v3197_v9 = vpop.eup %2349  ;;  %v3199_v15 = vadd.f32 1.0, %v761_v59 }
 0x1bd   : > { %3720 = vst [vmem:[#allocation54_spill] sm:$0xff] %v3189_v57  ;;  %v834_v32 = vmul.f32 0.5307027, %v2978_v55  ;;  %v3201_v58 = vadd.f32 1.0, %v760_v42  ;;  %v3203_v10 = vmul.f32 1.442695, %v1178_v34  ;;  %v3205_v47 = vpop.eup %2351  ;;  %2359 = vpow2.f32 %v1233_v60 }
 0x1be   : > { %v924_v54 = vadd.f32 0.7107069, %v892_v14  ;;  %v928_v44 = vadd.f32 0.7107069, %v896_v33  ;;  %v862_v8 = vadd.f32 -0.72657603, %v830_v51  ;;  %v3207_v35 = vpop.eup %2353  ;;  %v1275_v46 = vmul.f32 %v2887_v61, %v2995_v50 }
 0x1bf   : > { %v866_v57 = vadd.f32 -0.72657603, %v834_v32  ;;  %v1279_v59 = vmul.f32 %v2944_v62, %v3103_v17  ;;  %v1277_v61 = vmul.f32 %v2891_v6, %v3000_v37  ;;  %vm1309_vm2 = vcmp.ge.f32.partialorder %v2799_v19, 0.0 }
 0x1c0   : > { %v956_v31 = vmul.f32 %v2902_v25, %v924_v54  ;;  %v960_v42 = vmul.f32 %v2956_v27, %v928_v44  ;;  %v894_v34 = vmul.f32 %v2934_v26, %v862_v8  ;;  %v1339_v33 = vsub.f32 %v2796_v18, %v1275_v46 }
 0x1c1   : > { %v898_v60 = vmul.f32 %v2978_v55, %v866_v57  ;;  %v1343_v51 = vsub.f32 %v2818_v43, %v1279_v59  ;;  %v1281_v54 = vmul.f32 %v2951_v11, %v3138_v48  ;;  %vm1313_vm3 = vcmp.ge.f32.partialorder %v2821_v45, 0.0 }
 0x1c2   : > { %v988_v14 = vadd.f32 -0.14224836, %v956_v31  ;;  %v3223_v50 = vpop.eup %2355  ;;  %v992_v62 = vadd.f32 -0.14224836, %v960_v42  ;;  %v926_v17 = vadd.f32 0.7107069, %v894_v34  ;;  %v3228_v44 = vsel %vm1307_vm0, %v1339_v33, %v1275_v46 }
 0x1c3   : > { %v930_v32 = vadd.f32 0.7107069, %v898_v60  ;;  %v3230_v31 = vsel %vm1311_vm1, %v1343_v51, %v1279_v59  ;;  %v3233_v18 = vpop.eup %2357  ;;  %v1341_v46 = vsub.f32 %v2799_v19, %v1277_v61  ;;  %v1345_v48 = vsub.f32 %v2821_v45, %v1281_v54 }
 0x1c4   : > { %v1020_v57 = vmul.f32 %v2902_v25, %v988_v14  ;;  %v1024_v43 = vmul.f32 %v2956_v27, %v992_v62  ;;  %v958_v6 = vmul.f32 %v2934_v26, %v926_v17  ;;  %2361 = vrcp.f32 %v791_v39 }
 0x1c5   : > { %v962_v37 = vmul.f32 %v2978_v55, %v930_v32  ;;  %vm1308_vm4 = vcmp.ge.f32.partialorder %v2802_v22, 0.0  ;;  %v3247_v14 = vsel %vm1309_vm2, %v1341_v46, %v1277_v61  ;;  %v3249_v33 = vsel %vm1313_vm3, %v1345_v48, %v1281_v54 }
 0x1c6   : > { %v1052_v11 = vadd.f32 0.1274148, %v1020_v57  ;;  %v1056_v59 = vadd.f32 0.1274148, %v1024_v43  ;;  %v990_v42 = vadd.f32 -0.14224836, %v958_v6  ;;  %2363 = vrcp.f32 %v3199_v15 }
 0x1c7   : > { %v994_v34 = vadd.f32 -0.14224836, %v962_v37  ;;  %v836_v51 = vmul.f32 0.5307027, %v3013_v0  ;;  %v3252_v62 = vpop.eup %2359  ;;  %v840_v61 = vmul.f32 0.5307027, %v3076_v2  ;;  %2365 = vrcp.f32 %v3201_v58 }
 0x1c8   : > { %v1084_v60 = vmul.f32 %v2902_v25, %v1052_v11  ;;  %3721 = vst [vmem:[#allocation55_spill] sm:$0xff] %v3252_v62  ;;  %v1088_v45 = vmul.f32 %v2956_v27, %v1056_v59  ;;  %v1022_v39 = vmul.f32 %v2934_v26, %v990_v42  ;;  %v3259_v25 = vadd.f32 1.0, %v762_v1  ;;  %v3722_v57 = vld [vmem:[#allocation13_spill] sm:$0xff]  ;;  %v3723_v37 = vld [vmem:[#allocation19_spill] sm:$0xff]  ;;  %v3724_v1 = vld [vmem:[#allocation22_spill] sm:$0xff] }
 0x1c9   : > { %v1026_v17 = vmul.f32 %v2978_v55, %v994_v34  ;;  %v868_v54 = vadd.f32 -0.72657603, %v836_v51  ;;  %vm1312_vm5 = vcmp.ge.f32.partialorder %v3722_v57, 0.0  ;;  %v872_v46 = vadd.f32 -0.72657603, %v840_v61  ;;  %v3725_v61 = vld [vmem:[#allocation12_spill] sm:$0xff] }
 0x1ca   : > { %v1244_v19 = vmul.f32 %v1084_v60, %v2802_v22  ;;  %v1248_v43 = vmul.f32 %v1088_v45, %v3722_v57  ;;  %v1054_v6 = vadd.f32 0.1274148, %v1022_v39  ;;  %v838_v59 = vmul.f32 0.5307027, %v3036_v5 }
 0x1cb   : > { %v1058_v27 = vadd.f32 0.1274148, %v1026_v17  ;;  %v900_v48 = vmul.f32 %v3013_v0, %v868_v54  ;;  %v842_v51 = vmul.f32 0.5307027, %v3089_v7  ;;  %v904_v39 = vmul.f32 %v3076_v2, %v872_v46 }
 0x1cc   : > { %v1276_v11 = vmul.f32 %v3723_v37, %v1244_v19  ;;  %v1280_v42 = vmul.f32 %v3724_v1, %v1248_v43  ;;  %v1086_v34 = vmul.f32 %v2934_v26, %v1054_v6  ;;  %v870_v32 = vadd.f32 -0.72657603, %v838_v59  ;;  %v3726_v37 = vld [vmem:[#allocation14_spill] sm:$0xff]  ;;  %v3728_v1 = vld [vmem:[#allocation25_spill] sm:$0xff] }
 0x1cd   : > { %v1090_v60 = vmul.f32 %v2978_v55, %v1058_v27  ;;  %v932_v17 = vadd.f32 0.7107069, %v900_v48  ;;  %v874_v62 = vadd.f32 -0.72657603, %v842_v51  ;;  %v936_v43 = vadd.f32 0.7107069, %v904_v39 }
 0x1ce   : > { %v1340_v45 = vsub.f32 %v2802_v22, %v1276_v11  ;;  %v1344_v19 = vsub.f32 %v3722_v57, %v1280_v42  ;;  %v1246_v54 = vmul.f32 %v1086_v34, %v3725_v61  ;;  %v902_v6 = vmul.f32 %v3036_v5, %v870_v32  ;;  %v3281_v27 = vpop.eup %2361  ;;  %v3727_v48 = vld [vmem:[#allocation21_spill] sm:$0xff] }
 0x1cf   : > { %v1250_v8 = vmul.f32 %v1090_v60, %v3726_v37  ;;  %v964_v55 = vmul.f32 %v3013_v0, %v932_v17  ;;  %v906_v60 = vmul.f32 %v3089_v7, %v874_v62  ;;  %v968_v22 = vmul.f32 %v3076_v2, %v936_v43 }
 0x1d0   : > { %v1372_v26 = vsel %vm1308_vm4, %v1340_v45, %v1276_v11  ;;  %v1376_v46 = vsel %vm1312_vm5, %v1344_v19, %v1280_v42  ;;  %v1278_v59 = vmul.f32 %v3727_v48, %v1246_v54  ;;  %v934_v45 = vadd.f32 0.7107069, %v902_v6 }
 0x1d1   : > { %v1282_v34 = vmul.f32 %v3728_v1, %v1250_v8  ;;  %v1404_v51 = vpack.c.bf16 %v1376_v46, %v1372_v26  ;;  %v996_v11 = vadd.f32 -0.14224836, %v964_v55  ;;  %vm1310_vm6 = vcmp.ge.f32.partialorder %v3725_v61, 0.0 }
 0x1d2   : > { %v1342_v32 = vsub.f32 %v3725_v61, %v1278_v59  ;;  %v938_v17 = vadd.f32 0.7107069, %v906_v60  ;;  %vm1314_vm7 = vcmp.ge.f32.partialorder %v3726_v37, 0.0  ;;  %v1000_v57 = vadd.f32 -0.14224836, %v968_v22  ;;  %v3731_v60 = vld [vmem:[#allocation17_spill] sm:$0xff] }
 0x1d3   : > { %v1346_v39 = vsub.f32 %v3726_v37, %v1282_v34  ;;  %1714 = vmatprep.mubr.bf16.mxu0 %v1404_v51  ;;  %v1028_v8 = vmul.f32 %v3013_v0, %v996_v11  ;;  %v966_v62 = vmul.f32 %v3036_v5, %v934_v45  ;;  %v3729_v54 = vpack.c.bf16 %v3230_v31, %v3228_v44 }
 0x1d4   : > { %v1374_v42 = vsel %vm1310_vm6, %v1342_v32, %v1278_v59  ;;  %v970_v26 = vmul.f32 %v3089_v7, %v938_v17  ;;  %v835_v61 = vmul.f32 0.5307027, %v2987_v52  ;;  %v1032_v55 = vmul.f32 %v3076_v2, %v1000_v57  ;;  %v3732_v57 = vld [vmem:[#allocation29_spill] sm:$0xff] }
 0x1d5   : > { %v1378_v19 = vsel %vm1314_vm7, %v1346_v39, %v1282_v34  ;;  %1715 = vmatmul.mubr.bf16.vlgmr.msra.gmra.mrb[16].mxu0 %v3729_v54  ;;  %v1060_v6 = vadd.f32 0.1274148, %v1028_v8  ;;  %v998_v37 = vadd.f32 -0.14224836, %v966_v62  ;;  %v839_v48 = vmul.f32 0.5307027, %v3052_v40 }
 0x1d6   : > { %v1406_v43 = vpack.c.bf16 %v1378_v19, %v1374_v42  ;;  %v1002_v46 = vadd.f32 -0.14224836, %v970_v26  ;;  %v867_v59 = vadd.f32 -0.72657603, %v835_v61  ;;  %v1064_v44 = vadd.f32 0.1274148, %v1032_v55 }
 0x1d7   : > { %v1092_v31 = vmul.f32 %v3013_v0, %v1060_v6  ;;  %v1030_v1 = vmul.f32 %v3036_v5, %v998_v37  ;;  %v3730_v34 = vpack.c.bf16 %v3249_v33, %v3247_v14  ;;  %vm1316_vm8 = vcmp.ge.f32.partialorder %v3731_v60, 0.0  ;;  %v3733_v61 = vld [vmem:[#allocation38_spill] sm:$0xff] }
 0x1d8   : > { %1779 = vmatprep.mubr.bf16.mxu1 %v1406_v43  ;;  %vm1320_vm9 = vcmp.ge.f32.partialorder %v2966_v49, 0.0  ;;  %v1034_v15 = vmul.f32 %v3089_v7, %v1002_v46  ;;  %v871_v51 = vadd.f32 -0.72657603, %v839_v48  ;;  %v899_v22 = vmul.f32 %v2987_v52, %v867_v59  ;;  %v3734_v6 = vld [vmem:[#allocation18_spill] sm:$0xff]  ;;  %v3735_v48 = vld [vmem:[#allocation24_spill] sm:$0xff] }
 0x1d9   : > { %1780 = vmatmul.mubr.bf16.vlgmr.msra.gmra.mrb[16].mxu1 %v3730_v34  ;;  %v1096_v58 = vmul.f32 %v3076_v2, %v1064_v44  ;;  %v1252_v11 = vmul.f32 %v1092_v31, %v3731_v60  ;;  %v1062_v0 = vadd.f32 0.1274148, %v1030_v1  ;;  %v837_v45 = vmul.f32 0.5307027, %v2992_v41  ;;  %v3736_v1 = vld [vmem:[#allocation34_spill] sm:$0xff] }
 0x1da   : > { %v1066_v32 = vadd.f32 0.1274148, %v1034_v15  ;;  %v903_v14 = vmul.f32 %v3052_v40, %v871_v51  ;;  %v931_v33 = vadd.f32 0.7107069, %v899_v22  ;;  %v841_v39 = vmul.f32 0.5307027, %v3072_v56  ;;  %v3333_v51 = vpop.eup %2363 }
 0x1db   : > { %v1256_v17 = vmul.f32 %v1096_v58, %v2966_v49  ;;  %v1284_v8 = vmul.f32 %v3732_v57, %v1252_v11  ;;  %v1094_v62 = vmul.f32 %v3036_v5, %v1062_v0  ;;  %v869_v42 = vadd.f32 -0.72657603, %v837_v45  ;;  %v3337_v45 = vpop.eup %2365 }
 0x1dc   : > { %v1098_v2 = vmul.f32 %v3089_v7, %v1066_v32  ;;  %v935_v19 = vadd.f32 0.7107069, %v903_v14  ;;  %v963_v54 = vmul.f32 %v2987_v52, %v931_v33  ;;  %v873_v26 = vadd.f32 -0.72657603, %v841_v39 }
 0x1dd   : > { %v1288_v43 = vmul.f32 %v3733_v61, %v1256_v17  ;;  %v1348_v55 = vsub.f32 %v3731_v60, %v1284_v8  ;;  %v1254_v37 = vmul.f32 %v1094_v62, %v3734_v6  ;;  %v901_v46 = vmul.f32 %v2992_v41, %v869_v42 }
 0x1de   : > { %v1258_v59 = vmul.f32 %v1098_v2, %v3735_v48  ;;  %v967_v44 = vmul.f32 %v3052_v40, %v935_v19  ;;  %v995_v5 = vadd.f32 -0.14224836, %v963_v54  ;;  %v905_v31 = vmul.f32 %v3072_v56, %v873_v26 }
 0x1df   : > { %v1352_v7 = vsub.f32 %v2966_v49, %v1288_v43  ;;  %v1286_v34 = vmul.f32 %v3736_v1, %v1254_v37  ;;  %vm1318_vm10 = vcmp.ge.f32.partialorder %v3734_v6, 0.0  ;;  %v933_v15 = vadd.f32 0.7107069, %v901_v46  ;;  %v3737_v37 = vld [vmem:[#allocation15_spill] sm:$0xff] }
 0x1e0   : > { %v1290_v22 = vmul.f32 %v3083_v53, %v1258_v59  ;;  %v999_v58 = vadd.f32 -0.14224836, %v967_v44  ;;  %v1027_v11 = vmul.f32 %v2987_v52, %v995_v5  ;;  %v937_v0 = vadd.f32 0.7107069, %v905_v31  ;;  %v3738_v5 = vld [vmem:[#allocation20_spill] sm:$0xff] }
 0x1e1   : > { %v1380_v32 = vsel %vm1316_vm8, %v1348_v55, %v1284_v8  ;;  %v1384_v14 = vsel %vm1320_vm9, %v1352_v7, %v1288_v43  ;;  %v1350_v33 = vsub.f32 %v3734_v6, %v1286_v34  ;;  %v965_v39 = vmul.f32 %v2992_v41, %v933_v15  ;;  %v3739_v7 = vld [vmem:[#allocation26_spill] sm:$0xff] }
 0x1e2   : > { %v1408_v17 = vpack.c.bf16 %v1384_v14, %v1380_v32  ;;  %v1354_v57 = vsub.f32 %v3735_v48, %v1290_v22  ;;  %v1031_v53 = vmul.f32 %v3052_v40, %v999_v58  ;;  %v1059_v62 = vadd.f32 0.1274148, %v1027_v11  ;;  %v3740_v11 = vld [vmem:[#allocation35_spill] sm:$0xff] }
 0x1e3   : > { %vm1322_vm11 = vcmp.ge.f32.partialorder %v3735_v48, 0.0  ;;  %v1382_v42 = vsel %vm1318_vm10, %v1350_v33, %v1286_v34  ;;  %v969_v60 = vmul.f32 %v3072_v56, %v937_v0  ;;  %v997_v8 = vadd.f32 -0.14224836, %v965_v39 }
 0x1e4   : > { %1722 = vmatprep.mubr.bf16.mxu0 %v1408_v17  ;;  %v1386_v49 = vsel %vm1322_vm11, %v1354_v57, %v1290_v22  ;;  %v1063_v2 = vadd.f32 0.1274148, %v1031_v53  ;;  %v1091_v19 = vmul.f32 %v2987_v52, %v1059_v62  ;;  %v844_v54 = vmul.f32 0.5307027, %v3128_v21  ;;  %v3741_v17 = vld [vmem:[#allocation16_spill] sm:$0xff] }
 0x1e5   : > { %v1410_v26 = vpack.c.bf16 %v1386_v49, %v1382_v42  ;;  %v1001_v61 = vadd.f32 -0.14224836, %v969_v60  ;;  %v1029_v43 = vmul.f32 %v2992_v41, %v997_v8  ;;  %v848_v55 = vmul.f32 0.5307027, %v3175_v63  ;;  %v3742_v8 = vld [vmem:[#allocation23_spill] sm:$0xff] }
 0x1e6   : > { %2367 = vrcp.f32 %v3259_v25  ;;  %v1095_v6 = vmul.f32 %v3052_v40, %v1063_v2  ;;  %v1251_v46 = vmul.f32 %v1091_v19, %v3737_v37  ;;  %v876_v48 = vadd.f32 -0.72657603, %v844_v54  ;;  %v3743_v2 = vld [vmem:[#allocation27_spill] sm:$0xff] }
 0x1e7   : > { %1787 = vmatprep.mubr.bf16.mxu1 %v1410_v26  ;;  %vm1315_vm12 = vcmp.ge.f32.partialorder %v3737_v37, 0.0  ;;  %v1033_v52 = vmul.f32 %v3072_v56, %v1001_v61  ;;  %v1061_v59 = vadd.f32 0.1274148, %v1029_v43  ;;  %v880_v44 = vadd.f32 -0.72657603, %v848_v55 }
 0x1e8   : > { %v1255_v31 = vmul.f32 %v1095_v6, %v3738_v5  ;;  %v1283_v1 = vmul.f32 %v3739_v7, %v1251_v46  ;;  %v908_v34 = vmul.f32 %v3128_v21, %v876_v48  ;;  %v846_v25 = vmul.f32 0.5307027, %v3141_v36  ;;  %v3744_v46 = vld [vmem:[#allocation37_spill] sm:$0xff] }
 0x1e9   : > { %v1065_v15 = vadd.f32 0.1274148, %v1033_v52  ;;  %v1093_v40 = vmul.f32 %v2992_v41, %v1061_v59  ;;  %v912_v22 = vmul.f32 %v3175_v63, %v880_v44  ;;  %v850_v58 = vmul.f32 0.5307027, %v3183_v38 }
 0x1ea   : > { %v1287_v0 = vmul.f32 %v3740_v11, %v1255_v31  ;;  %v1347_v32 = vsub.f32 %v3737_v37, %v1283_v1  ;;  %v940_v14 = vadd.f32 0.7107069, %v908_v34  ;;  %v878_v33 = vadd.f32 -0.72657603, %v846_v25 }
 0x1eb   : > { %v1097_v39 = vmul.f32 %v3072_v56, %v1065_v15  ;;  %v1253_v57 = vmul.f32 %v1093_v40, %v3741_v17  ;;  %v944_v53 = vadd.f32 0.7107069, %v912_v22  ;;  %v882_v62 = vadd.f32 -0.72657603, %v850_v58 }
 0x1ec   : > { %vm1319_vm13 = vcmp.ge.f32.partialorder %v3738_v5, 0.0  ;;  %v1351_v41 = vsub.f32 %v3738_v5, %v1287_v0  ;;  %v972_v42 = vmul.f32 %v3128_v21, %v940_v14  ;;  %v910_v60 = vmul.f32 %v3141_v36, %v878_v33 }
 0x1ed   : > { %v1257_v49 = vmul.f32 %v1097_v39, %v3742_v8  ;;  %v1285_v19 = vmul.f32 %v3743_v2, %v1253_v57  ;;  %v976_v54 = vmul.f32 %v3175_v63, %v944_v53  ;;  %v914_v56 = vmul.f32 %v3183_v38, %v882_v62 }
 0x1ee   : > { %v1379_v26 = vsel %vm1315_vm12, %v1347_v32, %v1283_v1  ;;  %v1383_v61 = vsel %vm1319_vm13, %v1351_v41, %v1287_v0  ;;  %v1004_v43 = vadd.f32 -0.14224836, %v972_v42  ;;  %v942_v55 = vadd.f32 0.7107069, %v910_v60  ;;  %v3745_v32 = vld [vmem:[#allocation31_spill] sm:$0xff] }
 0x1ef   : > { %v1407_v6 = vpack.c.bf16 %v1383_v61, %v1379_v26  ;;  %v1289_v48 = vmul.f32 %v3744_v46, %v1257_v49  ;;  %v1349_v52 = vsub.f32 %v3741_v17, %v1285_v19  ;;  %v1008_v59 = vadd.f32 -0.14224836, %v976_v54 }
 0x1f0   : > { %v3383_v44 = vpop.eup %2367  ;;  %vm1317_vm14 = vcmp.ge.f32.partialorder %v3741_v17, 0.0  ;;  %v1036_v5 = vmul.f32 %v3128_v21, %v1004_v43  ;;  %v946_v31 = vadd.f32 0.7107069, %v914_v56  ;;  %v974_v7 = vmul.f32 %v3141_v36, %v942_v55 }
 0x1f1   : > { %1723 = vmatmul.mubr.bf16.gmra.mrb[20].mxu0 %v1407_v6  ;;  %vm1321_vm15 = vcmp.ge.f32.partialorder %v3742_v8, 0.0  ;;  %v1353_v37 = vsub.f32 %v3742_v8, %v1289_v48  ;;  %v1040_v1 = vmul.f32 %v3175_v63, %v1008_v59  ;;  %v843_v34 = vmul.f32 0.5307027, %v3114_v16  ;;  %v3746_v59 = vld [vmem:[#allocation32_spill] sm:$0xff] }
 0x1f2   : > { %v1068_v25 = vadd.f32 0.1274148, %v1036_v5  ;;  %v978_v15 = vmul.f32 %v3183_v38, %v946_v31  ;;  %v1006_v40 = vadd.f32 -0.14224836, %v974_v7  ;;  %v847_v22 = vmul.f32 0.5307027, %v3155_v24 }
 0x1f3   : > { %v1381_v58 = vsel %vm1317_vm14, %v1349_v52, %v1285_v19  ;;  %v1385_v11 = vsel %vm1321_vm15, %v1353_v37, %v1289_v48  ;;  %v1072_v0 = vadd.f32 0.1274148, %v1040_v1  ;;  %vm1324_vm0 = vcmp.ge.f32.partialorder %v3745_v32, 0.0 }
 0x1f4   : > { %v875_v14 = vadd.f32 -0.72657603, %v843_v34  ;;  %v1409_v33 = vpack.c.bf16 %v1385_v11, %v1381_v58  ;;  %v1100_v39 = vmul.f32 %v3128_v21, %v1068_v25  ;;  %v1010_v17 = vadd.f32 -0.14224836, %v978_v15 }
 0x1f5   : > { %v1038_v57 = vmul.f32 %v3141_v36, %v1006_v40  ;;  %v1104_v53 = vmul.f32 %v3175_v63, %v1072_v0  ;;  %vm1328_vm1 = vcmp.ge.f32.partialorder %v3057_v4, 0.0  ;;  %v879_v62 = vadd.f32 -0.72657603, %v847_v22 }
 0x1f6   : > { %v907_v41 = vmul.f32 %v3114_v16, %v875_v14  ;;  %1788 = vmatmul.mubr.bf16.gmra.mrb[20].mxu1 %v1409_v33  ;;  %v1260_v42 = vmul.f32 %v1100_v39, %v3745_v32  ;;  %v1042_v60 = vmul.f32 %v3183_v38, %v1010_v17  ;;  %v845_v49 = vmul.f32 0.5307027, %v3118_v30 }
 0x1f7   : > { %v1070_v8 = vadd.f32 0.1274148, %v1038_v57  ;;  %v1264_v21 = vmul.f32 %v1104_v53, %v3057_v4  ;;  %v911_v2 = vmul.f32 %v3155_v24, %v879_v62  ;;  %v849_v63 = vmul.f32 0.5307027, %v3168_v12 }
 0x1f8   : > { %v939_v19 = vadd.f32 0.7107069, %v907_v41  ;;  %v1292_v54 = vmul.f32 %v3120_v3, %v1260_v42  ;;  %v1074_v56 = vadd.f32 0.1274148, %v1042_v60  ;;  %v877_v61 = vadd.f32 -0.72657603, %v845_v49 }
 0x1f9   : > { %v1102_v26 = vmul.f32 %v3141_v36, %v1070_v8  ;;  %v1296_v43 = vmul.f32 %v3180_v28, %v1264_v21  ;;  %v943_v55 = vadd.f32 0.7107069, %v911_v2  ;;  %v881_v46 = vadd.f32 -0.72657603, %v849_v63  ;;  %v3747_v41 = vld [vmem:[#allocation28_spill] sm:$0xff]  ;;  %v3748_v63 = vld [vmem:[#allocation33_spill] sm:$0xff] }
 0x1fa   : > { %v971_v6 = vmul.f32 %v3114_v16, %v939_v19  ;;  %v1356_v48 = vsub.f32 %v3745_v32, %v1292_v54  ;;  %v1106_v52 = vmul.f32 %v3183_v38, %v1074_v56  ;;  %v909_v31 = vmul.f32 %v3118_v30, %v877_v61  ;;  %v3749_v56 = vld [vmem:[#allocation41_spill] sm:$0xff] }
 0x1fb   : > { %v1262_v5 = vmul.f32 %v1102_v26, %v3746_v59  ;;  %v1360_v3 = vsub.f32 %v3057_v4, %v1296_v43  ;;  %v975_v7 = vmul.f32 %v3155_v24, %v943_v55  ;;  %v913_v37 = vmul.f32 %v3168_v12, %v881_v46 }
 0x1fc   : > { %v1003_v36 = vadd.f32 -0.14224836, %v971_v6  ;;  %v1388_v28 = vsel %vm1324_vm0, %v1356_v48, %v1292_v54  ;;  %v1266_v1 = vmul.f32 %v1106_v52, %v3061_v29  ;;  %v941_v25 = vadd.f32 0.7107069, %v909_v31 }
 0x1fd   : > { %v1294_v34 = vmul.f32 %v3135_v23, %v1262_v5  ;;  %v1392_v38 = vsel %vm1328_vm1, %v1360_v3, %v1296_v43  ;;  %v1007_v15 = vadd.f32 -0.14224836, %v975_v7  ;;  %v945_v22 = vadd.f32 0.7107069, %v913_v37  ;;  %v3751_v5 = vld [vmem:[#allocation30_spill] sm:$0xff] }
 0x1fe   : > { %v1035_v40 = vmul.f32 %v3114_v16, %v1003_v36  ;;  %v1412_v58 = vpack.c.bf16 %v1392_v38, %v1388_v28  ;;  %v1298_v11 = vmul.f32 %v3187_v13, %v1266_v1  ;;  %v973_v32 = vmul.f32 %v3118_v30, %v941_v25  ;;  %v3752_v28 = vld [vmem:[#allocation36_spill] sm:$0xff] }
 0x1ff   : > { %v1358_v0 = vsub.f32 %v3746_v59, %v1294_v34  ;;  %2369 = vpow2.f32 %v3191_v20  ;;  %v1039_v14 = vmul.f32 %v3155_v24, %v1007_v15  ;;  %v977_v33 = vmul.f32 %v3168_v12, %v945_v22  ;;  %v3753_v25 = vld [vmem:[#allocation44_spill] sm:$0xff] }
 0x200   : > { %v1067_v23 = vadd.f32 0.1274148, %v1035_v40  ;;  %1730 = vmatprep.mubr.bf16.mxu0 %v1412_v58  ;;  %vm1326_vm2 = vcmp.ge.f32.partialorder %v3746_v59, 0.0  ;;  %vm1330_vm3 = vcmp.ge.f32.partialorder %v3061_v29, 0.0  ;;  %v1362_v4 = vsub.f32 %v3061_v29, %v1298_v11 }
 0x201   : > { %v1005_v39 = vadd.f32 -0.14224836, %v973_v32  ;;  %v1071_v13 = vadd.f32 0.1274148, %v1039_v14  ;;  %v1009_v57 = vadd.f32 -0.14224836, %v977_v33  ;;  %v1390_v20 = vsel %vm1326_vm2, %v1358_v0, %v1294_v34 }
 0x202   : > { %v1099_v17 = vmul.f32 %v3114_v16, %v1067_v23  ;;  %v852_v53 = vmul.f32 0.5307027, %v3223_v50  ;;  %v1394_v62 = vsel %vm1330_vm3, %v1362_v4, %v1298_v11  ;;  %vm1323_vm4 = vcmp.ge.f32.partialorder %v3747_v41, 0.0  ;;  %v3754_v11 = vld [vmem:[#allocation51_spill] sm:$0xff] }
 0x203   : > { %v1037_v42 = vmul.f32 %v3118_v30, %v1005_v39  ;;  %v856_v60 = vmul.f32 0.5307027, %v3337_v45  ;;  %v1414_v8 = vpack.c.bf16 %v1394_v62, %v1390_v20  ;;  %v1103_v49 = vmul.f32 %v3155_v24, %v1071_v13 }
 0x204   : > { %v1259_v29 = vmul.f32 %v1099_v17, %v3747_v41  ;;  %v1041_v21 = vmul.f32 %v3168_v12, %v1009_v57  ;;  %2371 = vpow2.f32 %v3203_v10  ;;  %v884_v2 = vadd.f32 -0.72657603, %v852_v53  ;;  %v3750_v10 = vld [vmem:[#allocation47_spill] sm:$0xff] }
 0x205   : > { %v1069_v16 = vadd.f32 0.1274148, %v1037_v42  ;;  %v888_v19 = vadd.f32 -0.72657603, %v856_v60  ;;  %1795 = vmatprep.mubr.bf16.mxu1 %v1414_v8  ;;  %v1263_v54 = vmul.f32 %v1103_v49, %v3748_v63  ;;  %vm1327_vm5 = vcmp.ge.f32.partialorder %v3748_v63, 0.0 }
 0x206   : > { %v1291_v26 = vmul.f32 %v3749_v56, %v1259_v29  ;;  %v1073_v61 = vadd.f32 0.1274148, %v1041_v21  ;;  %v916_v24 = vmul.f32 %v3223_v50, %v884_v2  ;;  %v854_v6 = vmul.f32 0.5307027, %v3233_v18 }
 0x207   : > { %v1101_v43 = vmul.f32 %v3118_v30, %v1069_v16  ;;  %v920_v55 = vmul.f32 %v3337_v45, %v888_v19  ;;  %v1295_v46 = vmul.f32 %v3750_v10, %v1263_v54  ;;  %v858_v59 = vmul.f32 0.5307027, %v3383_v44  ;;  %v3755_v19 = vld [vmem:[#allocation48_spill] sm:$0xff] }
 0x208   : > { %v1355_v48 = vsub.f32 %v3747_v41, %v1291_v26  ;;  %v1105_v52 = vmul.f32 %v3168_v12, %v1073_v61  ;;  %v948_v3 = vadd.f32 0.7107069, %v916_v24  ;;  %v886_v36 = vadd.f32 -0.72657603, %v854_v6 }
 0x209   : > { %v1261_v31 = vmul.f32 %v1101_v43, %v3751_v5  ;;  %v952_v7 = vadd.f32 0.7107069, %v920_v55  ;;  %v2370_v30 = vpop.eup %2369  ;;  %v1359_v37 = vsub.f32 %v3748_v63, %v1295_v46  ;;  %vm1325_vm6 = vcmp.ge.f32.partialorder %v3751_v5, 0.0  ;;  %v3756_v43 = vld [vmem:[#allocation42_spill] sm:$0xff]  ;;  %v3757_v55 = vld [vmem:[#allocation49_spill] sm:$0xff] }
 0x20a   : > { %v1265_v1 = vmul.f32 %v1105_v52, %v3752_v28  ;;  %v890_v34 = vadd.f32 -0.72657603, %v858_v59  ;;  %v980_v15 = vmul.f32 %v3223_v50, %v948_v3  ;;  %v918_v40 = vmul.f32 %v3233_v18, %v886_v36 }
 0x20b   : > { %v1293_v38 = vmul.f32 %v3753_v25, %v1261_v31  ;;  %v984_v12 = vmul.f32 %v3337_v45, %v952_v7  ;;  %v1387_v22 = vsel %vm1323_vm4, %v1355_v48, %v1291_v26  ;;  %v1391_v58 = vsel %vm1327_vm5, %v1359_v37, %v1295_v46 }
 0x20c   : > { %v1297_v0 = vmul.f32 %v3754_v11, %v1265_v1  ;;  %v922_v32 = vmul.f32 %v3383_v44, %v890_v34  ;;  %v1411_v14 = vpack.c.bf16 %v1391_v58, %v1387_v22  ;;  %v1012_v33 = vadd.f32 -0.14224836, %v980_v15  ;;  %v3759_v58 = vld [vmem:[#allocation43_spill] sm:$0xff] }
 0x20d   : > { %v1357_v23 = vsub.f32 %v3751_v5, %v1293_v38  ;;  %v1016_v4 = vadd.f32 -0.14224836, %v984_v12  ;;  %vm1329_vm7 = vcmp.ge.f32.partialorder %v3752_v28, 0.0  ;;  %v950_v13 = vadd.f32 0.7107069, %v918_v40 }
 0x20e   : > { %v1361_v39 = vsub.f32 %v3752_v28, %v1297_v0  ;;  %v954_v17 = vadd.f32 0.7107069, %v922_v32  ;;  %v2372_v57 = vpop.eup %2371  ;;  %1731 = vmatmul.mubr.bf16.gmra.mrb[24].mxu0 %v1411_v14  ;;  %v1044_v20 = vmul.f32 %v3223_v50, %v1012_v33  ;;  %v851_v41 = vmul.f32 0.5307027, %v3197_v9 }
 0x20f   : > { %v1389_v53 = vsel %vm1325_vm6, %v1357_v23, %v1293_v38  ;;  %v1048_v62 = vmul.f32 %v3337_v45, %v1016_v4  ;;  %v982_v60 = vmul.f32 %v3233_v18, %v950_v13  ;;  %v855_v49 = vmul.f32 0.5307027, %v3281_v27 }
 0x210   : > { %v1393_v42 = vsel %vm1329_vm7, %v1361_v39, %v1297_v0  ;;  %v986_v8 = vmul.f32 %v3383_v44, %v954_v17  ;;  %v1076_v21 = vadd.f32 0.1274148, %v1044_v20  ;;  %v883_v2 = vadd.f32 -0.72657603, %v851_v41  ;;  %v3761_v39 = vld [vmem:[#allocation55_spill] sm:$0xff]  ;;  %v3762_v20 = vld [vmem:[#allocation52_spill] sm:$0xff] }
 0x211   : > { %v1413_v29 = vpack.c.bf16 %v1393_v42, %v1389_v53  ;;  %v1080_v16 = vadd.f32 0.1274148, %v1048_v62  ;;  %2373 = vpow2.f32 %v3755_v19  ;;  %v1014_v63 = vadd.f32 -0.14224836, %v982_v60 }
 0x212   : > { %v1018_v54 = vadd.f32 -0.14224836, %v986_v8  ;;  %v887_v56 = vadd.f32 -0.72657603, %v855_v49  ;;  %v1108_v26 = vmul.f32 %v3223_v50, %v1076_v21  ;;  %vm1332_vm8 = vcmp.ge.f32.partialorder %v3756_v43, 0.0 }
 0x213   : > { %1796 = vmatmul.mubr.bf16.gmra.mrb[24].mxu1 %v1413_v29  ;;  %v1112_v61 = vmul.f32 %v3337_v45, %v1080_v16  ;;  %v915_v24 = vmul.f32 %v3197_v9, %v883_v2  ;;  %vm1336_vm9 = vcmp.ge.f32.partialorder %v3757_v55, 0.0  ;;  %v1046_v6 = vmul.f32 %v3233_v18, %v1014_v63  ;;  %v3758_v45 = vld [vmem:[#allocation53_spill] sm:$0xff]  ;;  %v3763_v2 = vld [vmem:[#allocation54_spill] sm:$0xff] }
 0x214   : > { %v1050_v10 = vmul.f32 %v3383_v44, %v1018_v54  ;;  %v919_v46 = vmul.f32 %v3281_v27, %v887_v56  ;;  %v1268_v48 = vmul.f32 %v1108_v26, %v3756_v43  ;;  %v853_v50 = vmul.f32 0.5307027, %v3205_v47  ;;  %v3764_v26 = vld [vmem:[#allocation39_spill] sm:$0xff] }
 0x215   : > { %v1272_v52 = vmul.f32 %v1112_v61, %v3757_v55  ;;  %v947_v59 = vadd.f32 0.7107069, %v915_v24  ;;  %2375 = vpow2.f32 %v3758_v45  ;;  %v1078_v5 = vadd.f32 0.1274148, %v1046_v6 }
 0x216   : > { %v1082_v31 = vadd.f32 0.1274148, %v1050_v10  ;;  %v951_v3 = vadd.f32 0.7107069, %v919_v46  ;;  %v1300_v7 = vmul.f32 %v3207_v35, %v1268_v48  ;;  %v857_v28 = vmul.f32 0.5307027, %v3333_v51 }
 0x217   : > { %v1304_v36 = vmul.f32 %v2370_v30, %v1272_v52  ;;  %v979_v37 = vmul.f32 %v3197_v9, %v947_v59  ;;  %v1110_v1 = vmul.f32 %v3233_v18, %v1078_v5  ;;  %v885_v38 = vadd.f32 -0.72657603, %v853_v50  ;;  %v3760_v30 = vld [vmem:[#allocation50_spill] sm:$0xff] }
 0x218   : > { %v1114_v34 = vmul.f32 %v3383_v44, %v1082_v31  ;;  %v983_v25 = vmul.f32 %v3281_v27, %v951_v3  ;;  %v1364_v15 = vsub.f32 %v3756_v43, %v1300_v7  ;;  %v889_v22 = vadd.f32 -0.72657603, %v857_v28 }
 0x219   : > { %v1368_v12 = vsub.f32 %v3757_v55, %v1304_v36  ;;  %v1011_v40 = vadd.f32 -0.14224836, %v979_v37  ;;  %v1270_v35 = vmul.f32 %v1110_v1, %v3759_v58  ;;  %v917_v32 = vmul.f32 %v3205_v47, %v885_v38  ;;  %v3765_v55 = vld [vmem:[#allocation45_spill] sm:$0xff]  ;;  %v3766_v37 = vld [vmem:[#allocation40_spill] sm:$0xff]  ;;  %v3767_v1 = vld [vmem:[#allocation46_spill] sm:$0xff] }
 0x21a   : > { %v1274_v11 = vmul.f32 %v1114_v34, %v3760_v30  ;;  %v1015_v0 = vadd.f32 -0.14224836, %v983_v25  ;;  %v1396_v18 = vsel %vm1332_vm8, %v1364_v15, %v1300_v7  ;;  %v921_v23 = vmul.f32 %v3333_v51, %v889_v22 }
 0x21b   : > { %v1400_v44 = vsel %vm1336_vm9, %v1368_v12, %v1304_v36  ;;  %v1043_v14 = vmul.f32 %v3197_v9, %v1011_v40  ;;  %v2374_v33 = vpop.eup %2373  ;;  %v1302_v13 = vmul.f32 %v3761_v39, %v1270_v35  ;;  %2377 = vpow2.f32 %v3762_v20  ;;  %v3539_v35 = vld [vmem:[%s3615_s4] ss:$0 sm:$0xff] }
 0x21c   : > { %v1416_v4 = vpack.c.bf16 %v1400_v44, %v1396_v18  ;;  %v1306_v17 = vmul.f32 %v2372_v57, %v1274_v11  ;;  %v1047_v53 = vmul.f32 %v3281_v27, %v1015_v0  ;;  %v949_v41 = vadd.f32 0.7107069, %v917_v32 }
 0x21d   : > { %v1075_v62 = vadd.f32 0.1274148, %v1043_v14  ;;  %v953_v42 = vadd.f32 0.7107069, %v921_v23  ;;  %vm1334_vm10 = vcmp.ge.f32.partialorder %v3759_v58, 0.0  ;;  %v1366_v60 = vsub.f32 %v3759_v58, %v1302_v13 }
 0x21e   : > { %1738 = vmatprep.mubr.bf16.mxu0 %v1416_v4  ;;  %v1370_v8 = vsub.f32 %v3760_v30, %v1306_v17  ;;  %v1079_v49 = vadd.f32 0.1274148, %v1047_v53  ;;  %vm1338_vm11 = vcmp.ge.f32.partialorder %v3760_v30, 0.0  ;;  %v981_v57 = vmul.f32 %v3205_v47, %v949_v41 }
 0x21f   : > { %v1107_v29 = vmul.f32 %v3197_v9, %v1075_v62  ;;  %v985_v21 = vmul.f32 %v3333_v51, %v953_v42  ;;  %v2376_v16 = vpop.eup %2375  ;;  %2379 = vpow2.f32 %v3763_v2  ;;  %v1398_v19 = vsel %vm1334_vm10, %v1366_v60, %v1302_v13 }
 0x220   : > { %v1402_v63 = vsel %vm1338_vm11, %v1370_v8, %v1306_v17  ;;  %v1111_v54 = vmul.f32 %v3281_v27, %v1079_v49  ;;  %v1013_v43 = vadd.f32 -0.14224836, %v981_v57  ;;  %vm1331_vm12 = vcmp.ge.f32.partialorder %v3764_v26, 0.0 }
 0x221   : > { %v1418_v56 = vpack.c.bf16 %v1402_v63, %v1398_v19  ;;  %v1267_v61 = vmul.f32 %v1107_v29, %v3764_v26  ;;  %v1017_v24 = vadd.f32 -0.14224836, %v985_v21  ;;  %vm1335_vm13 = vcmp.ge.f32.partialorder %v3765_v55, 0.0 }
 0x222   : > { %v1271_v6 = vmul.f32 %v1111_v54, %v3765_v55  ;;  %v1045_v10 = vmul.f32 %v3205_v47, %v1013_v43  ;;  %vm1333_vm14 = vcmp.ge.f32.partialorder %v3766_v37, 0.0  ;;  %vm1337_vm15 = vcmp.ge.f32.partialorder %v3767_v1, 0.0 }
 0x223   : > { %1803 = vmatprep.mubr.bf16.mxu1 %v1418_v56  ;;  %v1299_v9 = vmul.f32 %v2374_v33, %v1267_v61  ;;  %v1049_v46 = vmul.f32 %v3333_v51, %v1017_v24 }
 0x224   : > { %v1303_v48 = vmul.f32 %v2376_v16, %v1271_v6  ;;  %v1077_v59 = vadd.f32 0.1274148, %v1045_v10 }
 0x225   : > { %v1363_v52 = vsub.f32 %v3764_v26, %v1299_v9  ;;  %v1081_v50 = vadd.f32 0.1274148, %v1049_v46  ;;  %v2378_v45 = vpop.eup %2377 }
 0x226   : > { %v1367_v27 = vsub.f32 %v3765_v55, %v1303_v48  ;;  %v1109_v5 = vmul.f32 %v3205_v47, %v1077_v59 }
 0x227   : > { %v1113_v31 = vmul.f32 %v3333_v51, %v1081_v50  ;;  %v1395_v3 = vsel %vm1331_vm12, %v1363_v52, %v1299_v9 }
 0x228   : > { %v1399_v7 = vsel %vm1335_vm13, %v1367_v27, %v1303_v48  ;;  %v1269_v28 = vmul.f32 %v1109_v5, %v3766_v37 }
 0x229   : > { %v1415_v36 = vpack.c.bf16 %v1399_v7, %v1395_v3  ;;  %v1273_v34 = vmul.f32 %v1113_v31, %v3767_v1  ;;  %v2380_v25 = vpop.eup %2379 }
 0x22a   : > { %v1301_v38 = vmul.f32 %v2378_v45, %v1269_v28 }
 0x22b   : > { %1739 = vmatmul.mubr.bf16.gmra.mrb[28].mxu0 %v1415_v36  ;;  %v1305_v15 = vmul.f32 %v2380_v25, %v1273_v34 }
 0x22c   : > { %v1365_v12 = vsub.f32 %v3766_v37, %v1301_v38 }
 0x22d   : > { %v1369_v40 = vsub.f32 %v3767_v1, %v1305_v15 }
 0x22e   : > { %v1397_v47 = vsel %vm1333_vm14, %v1365_v12, %v1301_v38 }
 0x22f   : > { %v1401_v51 = vsel %vm1337_vm15, %v1369_v40, %v1305_v15 }
 0x230   : > { %v1417_v22 = vpack.c.bf16 %v1401_v51, %v1397_v47 }
 0x232   : > { %1804 = vmatmul.mubr.bf16.gmra.mrb[28].mxu1 %v1417_v22 }
 0x2a8   : > { %v2031_v58 = vpop.f32.mrb[16].mxu0 }
 0x2a9   : > { %v2032_v30 = vpop.f32.mrb[17].mxu0 }
 0x2aa   : > { %v2033_v11 = vadd.f32 %v2032_v30, %v2031_v58  ;;  %v2034_v0 = vpop.f32.mrb[18].mxu0 }
 0x2ab   : > { %v2035_v32 = vpop.f32.mrb[19].mxu0 }
 0x2ac   : > { %v2071_v18 = vpop.f32.mrb[16].mxu1  ;;  %v1717_v44 = vadd.f32 %v2033_v11, %v3539_v35  ;;  %v2036_v14 = vadd.f32 %v2035_v32, %v2034_v0 }
 0x2ad   : > { %v2072_v23 = vpop.f32.mrb[17].mxu1 }
 0x2ae   : > { %v2073_v33 = vadd.f32 %v2072_v23, %v2071_v18  ;;  %v2074_v4 = vpop.f32.mrb[18].mxu1  ;;  %v1720_v39 = vadd.f32 %v2036_v14, %v3539_v35 }
 0x2af   : > { %v2075_v13 = vpop.f32.mrb[19].mxu1 }
 0x2b0   : > { %v1782_v17 = vadd.f32 %v2073_v33, %v1717_v44  ;;  %v2076_v53 = vadd.f32 %v2075_v13, %v2074_v4 }
 0x2b2   : > { %1812 = vst [vmem:[%s3544_s28] sm:$0xff] %v1782_v17  ;;  %v1785_v20 = vadd.f32 %v2076_v53, %v1720_v39 }
 0x2b4   : > { %1813 = vst [vmem:[%s3544_s28 + $0x8] sm:$0xff] %v1785_v20 }
 0x2c4   : > { %v2037_v62 = vpop.f32.mrb[20].mxu0 }
 0x2c5   : > { %v2038_v41 = vpop.f32.mrb[21].mxu0 }
 0x2c6   : > { %v2039_v42 = vadd.f32 %v2038_v41, %v2037_v62  ;;  %v2040_v60 = vpop.f32.mrb[22].mxu0 }
 0x2c7   : > { %v2041_v8 = vpop.f32.mrb[23].mxu0 }
 0x2c8   : > { %v2042_v49 = vadd.f32 %v2041_v8, %v2040_v60  ;;  %v1725_v57 = vadd.f32 %v2039_v42, %v3539_v35 }
 0x2c9   : > { %v2077_v29 = vpop.f32.mrb[20].mxu1 }
 0x2ca   : > { %v2078_v21 = vpop.f32.mrb[21].mxu1  ;;  %v1728_v19 = vadd.f32 %v2042_v49, %v3539_v35 }
 0x2cb   : > { %v2079_v16 = vadd.f32 %v2078_v21, %v2077_v29  ;;  %v2080_v2 = vpop.f32.mrb[22].mxu1 }
 0x2cc   : > { %v2081_v63 = vpop.f32.mrb[23].mxu1 }
 0x2cd   : > { %v1790_v54 = vadd.f32 %v2079_v16, %v1725_v57  ;;  %v2082_v56 = vadd.f32 %v2081_v63, %v2080_v2 }
 0x2cf   : > { %1814 = vst [vmem:[%s3544_s28 + $0x10] sm:$0xff] %v1790_v54  ;;  %v1793_v26 = vadd.f32 %v2082_v56, %v1728_v19 }
 0x2d1   : > { %1815 = vst [vmem:[%s3544_s28 + $0x18] sm:$0xff] %v1793_v26 }
 0x2e1   : > { %v2043_v61 = vpop.f32.mrb[24].mxu0 }
 0x2e2   : > { %v2044_v43 = vpop.f32.mrb[25].mxu0 }
 0x2e3   : > { %v2045_v24 = vadd.f32 %v2044_v43, %v2043_v61  ;;  %v2046_v55 = vpop.f32.mrb[26].mxu0 }
 0x2e4   : > { %v2047_v6 = vpop.f32.mrb[27].mxu0 }
 0x2e5   : > { %v1733_v10 = vadd.f32 %v2045_v24, %v3539_v35  ;;  %v2048_v46 = vadd.f32 %v2047_v6, %v2046_v55 }
 0x2e6   : > { %v2083_v9 = vpop.f32.mrb[24].mxu1 }
 0x2e7   : > { %v2084_v48 = vpop.f32.mrb[25].mxu1  ;;  %v1736_v50 = vadd.f32 %v2048_v46, %v3539_v35 }
 0x2e8   : > { %v2085_v52 = vadd.f32 %v2084_v48, %v2083_v9  ;;  %v2086_v59 = vpop.f32.mrb[26].mxu1 }
 0x2e9   : > { %v2087_v27 = vpop.f32.mrb[27].mxu1 }
 0x2ea   : > { %v1798_v45 = vadd.f32 %v2085_v52, %v1733_v10  ;;  %v2088_v5 = vadd.f32 %v2087_v27, %v2086_v59 }
 0x2ec   : > { %1816 = vst [vmem:[%s3544_s28 + $0x20] sm:$0xff] %v1798_v45  ;;  %v1801_v31 = vadd.f32 %v2088_v5, %v1736_v50 }
 0x2ee   : > { %1817 = vst [vmem:[%s3544_s28 + $0x28] sm:$0xff] %v1801_v31 }
 0x2fe   : > { %v2049_v3 = vpop.f32.mrb[28].mxu0 }
 0x2ff   : > { %v2050_v7 = vpop.f32.mrb[29].mxu0 }
 0x300   : > { %v2051_v36 = vadd.f32 %v2050_v7, %v2049_v3  ;;  %v2052_v37 = vpop.f32.mrb[30].mxu0 }
 0x301   : > { %v2053_v28 = vpop.f32.mrb[31].mxu0 }
 0x302   : > { %v2054_v1 = vadd.f32 %v2053_v28, %v2052_v37  ;;  %v1741_v25 = vadd.f32 %v2051_v36, %v3539_v35 }
 0x304   : > { %v1744_v40 = vadd.f32 %v2054_v1, %v3539_v35 }
 0x305   : > { %v2089_v34 = vpop.f32.mrb[28].mxu1 }
 0x306   : > { %v2090_v38 = vpop.f32.mrb[29].mxu1 }
 0x307   : > { %v2091_v15 = vadd.f32 %v2090_v38, %v2089_v34  ;;  %v2092_v12 = vpop.f32.mrb[30].mxu1 }
 0x308   : > { %v2093_v47 = vpop.f32.mrb[31].mxu1 }
 0x309   : > { %v1806_v51 = vadd.f32 %v2091_v15, %v1741_v25  ;;  %v2094_v22 = vadd.f32 %v2093_v47, %v2092_v12 }
 0x30b   : > { %1818 = vst [vmem:[%s3544_s28 + $0x30] sm:$0xff] %v1806_v51  ;;  %v1809_v58 = vadd.f32 %v2094_v22, %v1744_v40 }
 0x30d   : > { %1819 = vst [vmem:[%s3544_s28 + $0x38] sm:$0xff] %v1809_v58 }
 0x30e   : > { %2480 = shalt.err (!%p2477_p2)
}
 0x30f   : > { %s2481_s24 = scalar_lea.hbm %s3565_s23, 1024  ;;  %s2485_s13 = scalar_lea.hbm %s3616_s5, 2048 }
 0x310   : > { %p2482_p13 = scmp.ne.s32.totalorder %s3565_s23, %s2481_s24  ;;  %p2486_p4 = scmp.lt.u32.totalorder %s3565_s23, %s3616_s5 }
 0x311   : > { %p2487_p7 = scmp.lt.u32.totalorder %s2485_s13, %s2481_s24  ;;  %p2489_p11 = scmp.lt.u32.totalorder %s2481_s24, %s3565_s23 }
 0x312   : > { %p2483_p6 = pnand %p2482_p13, %p3768_p0 }
 0x313   : > { %p2488_p8 = por %p2487_p7, %p2486_p4 }
 0x314   : > { %p2484_p10 = pneg %p2483_p6 }
 0x315   : > { %p2490_p1 = por %p2489_p11, %p2488_p8 }
 0x317   : > { %p2491_p3 = pnand %p2490_p1, %p2484_p10 }
 0x319   : > { %2494 = shalt.err (!%p2491_p3)
}
 0x31a   : > { %s2548_s15 = smov 128   ;;  %s2549_s30 = smov 8  }
 0x31b   : > { %2105 = dma.vmem_to_hbm [thread:$0]  (%p3768_p0), %s3560_s14, 1024, %s3565_s23, %s1821_s7, %s2548_s15, %s2548_s15, %s2549_s30  }
 0x31c PF: > { %s1849_s11 = sand.u32 1, %s2525_s18   ;;  %p3769_p5 = scmp.ne.s32.totalorder %s3669_s25, 0 }
 0x31d   : > { %p3770_p9 = scmp.ge.s32.totalorder %s2537_s21, 2  ;;  %s1850_s6 = scalar_lea.sflag [#allocation4], %s1849_s11 }
 0x31f   : > { %p2119_p12 = pnand %p3770_p9, %p3769_p5 }
 0x321   : > { %2520 = dma.done.wait (!%p2119_p12), %s1850_s6, 1024  }
 0x322   : > { %2522 = vsyncadd (!%p2119_p12), %s1850_s6, 4294966272  ;;  %p19_p2 = scmp.ge.s32.totalorder %s2693_s16, 4   ;;  %s3771_s18 = smov %s2529_s19 }
 0x323   : > { %s3772_s19 = smov %s2533_s20  ;;  %s3773_s20 = smov %s2702_s27 }
 0x324   : > { %s3774_s21 = smov %s2693_s16  ;;  %21 = sbr.rel (!%p19_p2) target bundleno = 6 (0x6), region = 93 }
 0x32b   :  { %1855 = vsyncpa [#allocation3], 1 }
 0x32c   :  { %1857 = vsyncpa [#allocation3 + $0x1], 1 }
 0x32d   :  { %1858 = vsyncpa [#allocation6], 1 }
 0x32e   :  { %1859 = vsyncpa [#allocation4], 1 }
 0x32f   :  { %1861 = vsyncpa [#allocation4 + $0x1], 1 }

</bundles_post_ra>
